<compile_context>
chip_gen: v5e
topology: v5e:2x2
jax: 0.10.0
libtpu: 0.0.40
codegen_flags: <defaults>
</compile_context>

<pallas_src>
import jax
import jax.numpy as jnp
from jax.experimental import pallas as pl
from jax.experimental.pallas import tpu as pltpu

BN_EPS = 1e-5
LANE = 128
SUBLANE = 16          # bf16 sublane quantum (covers the f32 input's 8 as well)


def _round_up(n, m):
    return ((n + m - 1) // m) * m


def _choose_bm(B, block_m):
    """Pick the batch tile size.

    Small B: one tile padded only to the 16-row sublane quantum.
    Large B: MXU-friendly candidate minimizing padded rows, preferring an even
    step count (v7x megacore) and then larger tiles (less per-step overhead).
    bm is capped at 1024 so x/out double-buffers + f32 intermediates stay well
    under the default 32 MiB scoped VMEM (v7x has only 64 MiB physical VMEM).
    """
    cap = min(max(block_m, LANE), 1024)
    b16 = _round_up(B, SUBLANE)
    if b16 <= cap:
        return b16
    best_key, best_bm = None, LANE
    for bm in (1024, 512, 384, 256, 128):
        if bm > cap:
            continue
        b_pad = _round_up(B, bm)
        steps = b_pad // bm
        key = (b_pad - B, steps % 2, -bm)   # waste, odd-steps penalty, prefer big
        if best_key is None or key < best_key:
            best_key, best_bm = key, bm
    return best_bm


def _mlp_kernel(x_ref, w1_ref, b1_ref, w2_ref, b2_ref, w3_ref, b3_ref, o_ref):
    """One batch tile: (BM, 768) f32 -> (BM, n_pad) bf16.  BN already folded."""
    # Cast on the VPU inside the kernel; x is read from HBM once, as f32.
    x = x_ref[...].astype(w1_ref.dtype)                                 # (BM, 768) bf16

    h1 = jnp.dot(x, w1_ref[...], preferred_element_type=jnp.float32) + b1_ref[...]
    h1 = jnp.maximum(h1, 0.0).astype(w1_ref.dtype)                      # ReLU -> bf16

    h2 = jnp.dot(h1, w2_ref[...], preferred_element_type=jnp.float32) + b2_ref[...]
    h2 = jnp.maximum(h2, 0.0).astype(w2_ref.dtype)

    o = jnp.dot(h2, w3_ref[...], preferred_element_type=jnp.float32) + b3_ref[...]
    o_ref[...] = o.astype(o_ref.dtype)


def prepare_params(params, *, padded_classes=None, compute_dtype=jnp.bfloat16):
    """Fold eval-mode BatchNorm into the preceding Linears (done ONCE, offline),
    pad the classifier head to a lane-dense 128-wide output, cast weights to
    bf16.  Biases stay f32 for the f32 epilogue."""
    s1 = params["g1"] * jax.lax.rsqrt(params["v1"] + BN_EPS)            # (1, 512)
    w1 = params["w1"] * s1
    b1 = (params["b1"] - params["m1"]) * s1 + params["be1"]

    s2 = params["g2"] * jax.lax.rsqrt(params["v2"] + BN_EPS)            # (1, 256)
    w2 = params["w2"] * s2
    b2 = (params["b2"] - params["m2"]) * s2 + params["be2"]

    w3, b3 = params["w3"], params["b3"]
    n = w3.shape[1]
    n_pad = padded_classes if padded_classes is not None else _round_up(n, LANE)
    if n_pad != n:
        w3 = jnp.pad(w3, ((0, 0), (0, n_pad - n)))
        b3 = jnp.pad(b3, ((0, 0), (0, n_pad - n)))

    return {
        "w1": w1.astype(compute_dtype), "b1": b1.astype(jnp.float32),
        "w2": w2.astype(compute_dtype), "b2": b2.astype(jnp.float32),
        "w3": w3.astype(compute_dtype), "b3": b3.astype(jnp.float32),
    }


def clinical_bert_classifier_forward(x, fused, num_classes, *, block_m=1024):
    """Fused forward. x: (B, 768) f32 -> (B, num_classes) f32."""
    B, d_in = x.shape
    d1 = fused["w1"].shape[1]
    d2 = fused["w2"].shape[1]
    n_pad = fused["w3"].shape[1]
    out_dtype = jnp.bfloat16

    bm = _choose_bm(B, block_m)
    b_pad = _round_up(B, bm)

    # No cast here: kernel reads f32 directly.  Pad rows only when needed.
    xp = x if b_pad == B else jnp.pad(x, ((0, b_pad - B), (0, 0)))

    grid = (b_pad // bm,)

    flops = 2 * b_pad * (d_in * d1 + d1 * d2 + d2 * n_pad)
    bytes_accessed = (
        xp.size * xp.dtype.itemsize                                     # x read as f32
        + sum(fused[k].size * fused[k].dtype.itemsize
              for k in ("w1", "b1", "w2", "b2", "w3", "b3"))
        + b_pad * n_pad * jnp.dtype(out_dtype).itemsize                 # bf16 logits
    )

    resident = lambda i: (0, 0)   # weights/biases: DMA'd once, stay VMEM-resident

    def wspec(shape):
        # Constant across grid steps -> single-buffered (no pointless 2x VMEM).
        return pl.BlockSpec(shape, resident, pipeline_mode=pl.Buffered(buffer_count=1))

    out = pl.pallas_call(
        _mlp_kernel,
        out_shape=jax.ShapeDtypeStruct((b_pad, n_pad), out_dtype),
        grid=grid,
        in_specs=[
            pl.BlockSpec((bm, d_in), lambda i: (i, 0)),   # x tile (f32)
            wspec((d_in, d1)),                            # w1' (BN-folded, bf16)
            wspec((1, d1)),                               # b1' (f32)
            wspec((d1, d2)),                              # w2'
            wspec((1, d2)),                               # b2'
            wspec((d2, n_pad)),                           # w3 (lane-padded)
            wspec((1, n_pad)),                            # b3 (lane-padded)
        ],
        out_specs=pl.BlockSpec((bm, n_pad), lambda i: (i, 0)),
        compiler_params=pltpu.CompilerParams(
            dimension_semantics=("parallel",),
        ),
        cost_estimate=pl.CostEstimate(
            flops=flops, transcendentals=0, bytes_accessed=bytes_accessed),
    )(xp, fused["w1"], fused["b1"], fused["w2"], fused["b2"],
      fused["w3"], fused["b3"])

    # Strip batch padding and the lane padding of the classifier head; logits f32.
    return out[:B, :num_classes].astype(jnp.float32)


def init_params(key, input_dim=768, num_classes=16):
    """Deterministic synthetic parameters matching nn.Linear / nn.BatchNorm1d shapes."""
    dims = [(input_dim, 512), (512, 256), (256, num_classes)]
    keys = jax.random.split(key, 8)
    params = {}

    # Linear layers (PyTorch weight is (out, in); we store the transpose (in, out)).
    for i, (din, dout) in enumerate(dims, start=1):
        bound = 1.0 / jnp.sqrt(float(din))
        params[f"w{i}"] = jax.random.uniform(
            keys[2 * (i - 1)], (din, dout), jnp.float32, minval=-bound, maxval=bound
        )
        params[f"b{i}"] = jax.random.uniform(
            keys[2 * (i - 1) + 1], (1, dout), jnp.float32, minval=-bound, maxval=bound
        )

    # BatchNorm1d layers: gamma, beta, running_mean, running_var (as (1, F) rows).
    for i, f in [(1, 512), (2, 256)]:
        params[f"g{i}"] = jnp.ones((1, f), jnp.float32)
        params[f"be{i}"] = jnp.zeros((1, f), jnp.float32)
        params[f"m{i}"] = 0.01 * jax.random.normal(keys[5 + i], (1, f), jnp.float32)
        params[f"v{i}"] = jnp.ones((1, f), jnp.float32) + 0.1 * jnp.abs(
            jax.random.normal(jax.random.fold_in(keys[5 + i], 7), (1, f), jnp.float32)
        )
    return params


def reference_forward(x, params):
    """Pure-JAX f32 reference (eval-mode BN, identity dropout) on the original params."""
    h = x @ params["w1"] + params["b1"]
    h = (h - params["m1"]) * params["g1"] / jnp.sqrt(params["v1"] + BN_EPS) + params["be1"]
    h = jnp.maximum(h, 0.0)
    h = h @ params["w2"] + params["b2"]
    h = (h - params["m2"]) * params["g2"] / jnp.sqrt(params["v2"] + BN_EPS) + params["be2"]
    h = jnp.maximum(h, 0.0)
    return h @ params["w3"] + params["b3"]


def reference_forward_fused(x, fused, num_classes):
    """Pure-JAX reference using the same folded/bf16 numerics as the kernel
    (bf16 inputs/activations, f32 accumulation, bf16 logit rounding)."""
    xb = x.astype(fused["w1"].dtype)
    h = jnp.dot(xb, fused["w1"], preferred_element_type=jnp.float32) + fused["b1"]
    h = jnp.maximum(h, 0.0).astype(fused["w1"].dtype)
    h = jnp.dot(h, fused["w2"], preferred_element_type=jnp.float32) + fused["b2"]
    h = jnp.maximum(h, 0.0).astype(fused["w2"].dtype)
    out = jnp.dot(h, fused["w3"], preferred_element_type=jnp.float32) + fused["b3"]
    out = out.astype(jnp.bfloat16).astype(jnp.float32)
    return out[:, :num_classes]


if __name__ == "__main__":
    key = jax.random.PRNGKey(0)
    k_x, k_p, k_x2 = jax.random.split(key, 3)

    B, input_dim, num_classes = 8, 768, 16
    x = jax.random.normal(k_x, (B, input_dim), jnp.float32)
    params = init_params(k_p, input_dim=input_dim, num_classes=num_classes)

    # One-time offline parameter prep: BN fold + bf16 cast + head padding.
    fused = prepare_params(params)

    # --- Small-batch path (single 16-row tile, grid = 1) -----------------
    out = clinical_bert_classifier_forward(x, fused, num_classes)
    out = jax.block_until_ready(out)
    assert out.shape == (B, num_classes)

    # Tight check vs a JAX reference with identical folded/bf16 numerics.
    ref_fused = reference_forward_fused(x, fused, num_classes)
    assert jnp.allclose(out, ref_fused, atol=1e-2, rtol=1e-2), "mismatch vs fused reference"

    # Loose check vs the original full-f32 eval-mode module semantics.
    # NOTE: bf16 activations/logits intentionally deviate from PyTorch f32 by
    # up to ~1e-2 relative; the 5e-2 tolerance reflects that.
    ref_f32 = reference_forward(x, params)
    assert jnp.allclose(out, ref_f32, atol=5e-2, rtol=5e-2), "mismatch vs f32 eval reference"

    # --- Multi-tile / padded path (grid > 1, B not a tile multiple) ------
    B2 = 272
    x2 = jax.random.normal(k_x2, (B2, input_dim), jnp.float32)
    out2 = clinical_bert_classifier_forward(x2, fused, num_classes, block_m=128)
    out2 = jax.block_until_ready(out2)
    assert out2.shape == (B2, num_classes)
    ref2 = reference_forward_fused(x2, fused, num_classes)
    assert jnp.allclose(out2, ref2, atol=1e-2, rtol=1e-2), "multi-tile mismatch"

    print("KERNEL_OK")
</pallas_src>

<mosaic_0001>
module attributes {stable_mosaic.version = 11 : i64} {
  func.func @_mlp_kernel(%arg0: i32, %arg1: memref<16x768xf32, #tpu.memory_space<vmem>>, %arg2: memref<768x512xbf16, #tpu.memory_space<vmem>>, %arg3: memref<1x512xf32, #tpu.memory_space<vmem>>, %arg4: memref<512x256xbf16, #tpu.memory_space<vmem>>, %arg5: memref<1x256xf32, #tpu.memory_space<vmem>>, %arg6: memref<256x128xbf16, #tpu.memory_space<vmem>>, %arg7: memref<1x128xf32, #tpu.memory_space<vmem>>, %arg8: memref<16x128xbf16, #tpu.memory_space<vmem>>) attributes {dimension_semantics = [#tpu.dimension_semantics<parallel>], iteration_bounds = array<i64: 1>, scalar_prefetch = 0 : i64, scratch_operands = 0 : i64, tpu.core_type = #tpu.core_type<tc>, window_params = [{transform_indices = @transform_0, window_bounds = array<i64: 16, 768>}, {pipeline_mode = #tpu.pipeline_mode<synchronous>, transform_indices = @transform_1, window_bounds = array<i64: 768, 512>}, {pipeline_mode = #tpu.pipeline_mode<synchronous>, transform_indices = @transform_2, window_bounds = array<i64: 1, 512>}, {pipeline_mode = #tpu.pipeline_mode<synchronous>, transform_indices = @transform_3, window_bounds = array<i64: 512, 256>}, {pipeline_mode = #tpu.pipeline_mode<synchronous>, transform_indices = @transform_4, window_bounds = array<i64: 1, 256>}, {pipeline_mode = #tpu.pipeline_mode<synchronous>, transform_indices = @transform_5, window_bounds = array<i64: 256, 128>}, {pipeline_mode = #tpu.pipeline_mode<synchronous>, transform_indices = @transform_6, window_bounds = array<i64: 1, 128>}, {transform_indices = @transform_7, window_bounds = array<i64: 16, 128>}]} {
    %c0 = arith.constant 0 : index
    %c0_0 = arith.constant 0 : index
    %0 = vector.load %arg1[%c0, %c0_0] : memref<16x768xf32, #tpu.memory_space<vmem>>, vector<16x768xf32>
    %1 = arith.truncf %0 : vector<16x768xf32> to vector<16x768xbf16>
    %c0_1 = arith.constant 0 : index
    %c0_2 = arith.constant 0 : index
    %2 = vector.load %arg2[%c0_1, %c0_2] : memref<768x512xbf16, #tpu.memory_space<vmem>>, vector<768x512xbf16>
    %cst = arith.constant dense<0.000000e+00> : vector<16x512xf32>
    %3 = tpu.matmul %1, %2, %cst {dimension_numbers = #tpu.dot_dimension_numbers<[1], [0], [0], [1], [0, 0, 1, 1], [], []>} : vector<16x768xbf16>, vector<768x512xbf16>, vector<16x512xf32> -> vector<16x512xf32>
    %c0_3 = arith.constant 0 : index
    %c0_4 = arith.constant 0 : index
    %4 = vector.load %arg3[%c0_3, %c0_4] : memref<1x512xf32, #tpu.memory_space<vmem>>, vector<1x512xf32>
    %5 = vector.broadcast %4 : vector<1x512xf32> to vector<16x512xf32>
    %6 = arith.addf %3, %5 : vector<16x512xf32>
    %cst_5 = arith.constant 0.000000e+00 : f32
    %7 = vector.broadcast %cst_5 : f32 to vector<16x512xf32>
    %8 = arith.maximumf %6, %7 : vector<16x512xf32>
    %9 = arith.truncf %8 : vector<16x512xf32> to vector<16x512xbf16>
    %c0_6 = arith.constant 0 : index
    %c0_7 = arith.constant 0 : index
    %10 = vector.load %arg4[%c0_6, %c0_7] : memref<512x256xbf16, #tpu.memory_space<vmem>>, vector<512x256xbf16>
    %cst_8 = arith.constant dense<0.000000e+00> : vector<16x256xf32>
    %11 = tpu.matmul %9, %10, %cst_8 {dimension_numbers = #tpu.dot_dimension_numbers<[1], [0], [0], [1], [0, 0, 1, 1], [], []>} : vector<16x512xbf16>, vector<512x256xbf16>, vector<16x256xf32> -> vector<16x256xf32>
    %c0_9 = arith.constant 0 : index
    %c0_10 = arith.constant 0 : index
    %12 = vector.load %arg5[%c0_9, %c0_10] : memref<1x256xf32, #tpu.memory_space<vmem>>, vector<1x256xf32>
    %13 = vector.broadcast %12 : vector<1x256xf32> to vector<16x256xf32>
    %14 = arith.addf %11, %13 : vector<16x256xf32>
    %cst_11 = arith.constant 0.000000e+00 : f32
    %15 = vector.broadcast %cst_11 : f32 to vector<16x256xf32>
    %16 = arith.maximumf %14, %15 : vector<16x256xf32>
    %17 = arith.truncf %16 : vector<16x256xf32> to vector<16x256xbf16>
    %c0_12 = arith.constant 0 : index
    %c0_13 = arith.constant 0 : index
    %18 = vector.load %arg6[%c0_12, %c0_13] : memref<256x128xbf16, #tpu.memory_space<vmem>>, vector<256x128xbf16>
    %cst_14 = arith.constant dense<0.000000e+00> : vector<16x128xf32>
    %19 = tpu.matmul %17, %18, %cst_14 {dimension_numbers = #tpu.dot_dimension_numbers<[1], [0], [0], [1], [0, 0, 1, 1], [], []>} : vector<16x256xbf16>, vector<256x128xbf16>, vector<16x128xf32> -> vector<16x128xf32>
    %c0_15 = arith.constant 0 : index
    %c0_16 = arith.constant 0 : index
    %20 = vector.load %arg7[%c0_15, %c0_16] : memref<1x128xf32, #tpu.memory_space<vmem>>, vector<1x128xf32>
    %21 = vector.broadcast %20 : vector<1x128xf32> to vector<16x128xf32>
    %22 = arith.addf %19, %21 : vector<16x128xf32>
    %23 = arith.truncf %22 : vector<16x128xf32> to vector<16x128xbf16>
    %c0_17 = arith.constant 0 : index
    %c0_18 = arith.constant 0 : index
    %24 = vector.load %arg8[%c0_17, %c0_18] : memref<16x128xbf16, #tpu.memory_space<vmem>>, vector<16x128xbf16>
    tpu.vector_store %arg8[%c0_17, %c0_18], %23 {strides = array<i32>} : memref<16x128xbf16, #tpu.memory_space<vmem>>, vector<16x128xbf16>,
    return
  }
  func.func @transform_0(%arg0: i32) -> (i32, i32) {
    %c0_i32 = arith.constant 0 : i32
    %c0_i32_0 = arith.constant 0 : i32
    return %arg0, %c0_i32 : i32, i32
  }
  func.func @transform_1(%arg0: i32) -> (i32, i32) {
    %c0_i32 = arith.constant 0 : i32
    %c0_i32_0 = arith.constant 0 : i32
    %c0_i32_1 = arith.constant 0 : i32
    return %c0_i32, %c0_i32_0 : i32, i32
  }
  func.func @transform_2(%arg0: i32) -> (i32, i32) {
    %c0_i32 = arith.constant 0 : i32
    %c0_i32_0 = arith.constant 0 : i32
    %c0_i32_1 = arith.constant 0 : i32
    return %c0_i32, %c0_i32_0 : i32, i32
  }
  func.func @transform_3(%arg0: i32) -> (i32, i32) {
    %c0_i32 = arith.constant 0 : i32
    %c0_i32_0 = arith.constant 0 : i32
    %c0_i32_1 = arith.constant 0 : i32
    return %c0_i32, %c0_i32_0 : i32, i32
  }
  func.func @transform_4(%arg0: i32) -> (i32, i32) {
    %c0_i32 = arith.constant 0 : i32
    %c0_i32_0 = arith.constant 0 : i32
    %c0_i32_1 = arith.constant 0 : i32
    return %c0_i32, %c0_i32_0 : i32, i32
  }
  func.func @transform_5(%arg0: i32) -> (i32, i32) {
    %c0_i32 = arith.constant 0 : i32
    %c0_i32_0 = arith.constant 0 : i32
    %c0_i32_1 = arith.constant 0 : i32
    return %c0_i32, %c0_i32_0 : i32, i32
  }
  func.func @transform_6(%arg0: i32) -> (i32, i32) {
    %c0_i32 = arith.constant 0 : i32
    %c0_i32_0 = arith.constant 0 : i32
    %c0_i32_1 = arith.constant 0 : i32
    return %c0_i32, %c0_i32_0 : i32, i32
  }
  func.func @transform_7(%arg0: i32) -> (i32, i32) {
    %c0_i32 = arith.constant 0 : i32
    %c0_i32_0 = arith.constant 0 : i32
    return %arg0, %c0_i32 : i32, i32
  }
}

</mosaic_0001>

<bundles_post_ra>
// kernel: tpu_custom_call.1
= control target key start
LH: loop header
LB: loop body
LE: loop exit
PB: predicated region body
PF: predicated region fallthrough
CT: control target
= control target key end

     0   :  { %12 = vsyncpa [#allocation3], 0  ;;  %s3989_s0 = inlined_call_operand.hbm [shape: f32[16,768], index: 0, kind: input, shape index: {}]   ;;  %s3990_s1 = inlined_call_operand.hbm [shape: bf16[768,512], index: 1, kind: input, shape index: {}]   ;;  %s3991_s2 = inlined_call_operand.hbm [shape: f32[1,512], index: 2, kind: input, shape index: {}]   ;;  %s3992_s3 = inlined_call_operand.hbm [shape: bf16[512,256], index: 3, kind: input, shape index: {}]   ;;  %s3993_s4 = inlined_call_operand.vmem [shape: f32[1,256], index: 4, kind: input, shape index: {}]   ;;  %s3994_s5 = inlined_call_operand.hbm [shape: bf16[256,128], index: 5, kind: input, shape index: {}]   ;;  %s3995_s6 = inlined_call_operand.vmem [shape: f32[1,128], index: 6, kind: input, shape index: {}]   ;;  %s3996_s7 = inlined_call_operand.hbm [shape: bf16[16,128], index: 7, kind: output, shape index: {}]  }
   0x1   :  { %13 = vsyncpa [#allocation6], 0 }
   0x2   :  { %14 = vsyncpa [#allocation9], 0  ;;  %s33_s26 = sshll.u32 %s3990_s1, 4  ;;  %s34_s26 = int_to_ptr.hbm [resolvable:$true] %s33_s26 }
   0x3   :  { %15 = vsyncpa [#allocation4], 0  ;;  %s3856_s27 = smov [#allocation5]   ;;  %s57_s8 = sshll.u32 %s3992_s3, 4  ;;  %s58_s8 = int_to_ptr.hbm [resolvable:$true] %s57_s8 }
   0x4   :  { %s35_s28 = sshll.u32 %s3856_s27, 4  ;;  %s3857_s9 = smov 256   ;;  %s36_s28 = int_to_ptr.vmem [resolvable:$true] %s35_s28 }
   0x5   :  { %s3858_s10 = smov 16   ;;  %s3859_s11 = smov [#allocation8]  }
   0x6   :  { %41 = dma.hbm_to_vmem [thread:$0]  %s34_s26, 24576, %s36_s28, [#allocation6], %s3857_s9, %s3857_s9, %s3858_s10  }
   0x7   :  { %s59_s12 = sshll.u32 %s3859_s11, 4  ;;  %s3860_s13 = smov 128   ;;  %s60_s12 = int_to_ptr.vmem [resolvable:$true] %s59_s12 }
   0x8   :  { %s3861_s14 = smov 8   ;;  %s20_s16 = sshll.u32 %s3989_s0, 4  ;;  %s21_s16 = int_to_ptr.hbm [resolvable:$true] %s20_s16 }
   0x9   :  { %65 = dma.hbm_to_vmem [thread:$0]  %s58_s8, 8192, %s60_s12, [#allocation9], %s3860_s13, %s3860_s13, %s3861_s14  }
   0xa   :  { %s3862_s17 = smov [#allocation2]   ;;  %s47_s20 = sshll.u32 %s3991_s2, 4  ;;  %s48_s20 = int_to_ptr.hbm [resolvable:$true] %s47_s20 }
   0xb   :  { %s22_s18 = sshll.u32 %s3862_s17, 4  ;;  %s3863_s21 = smov 768   ;;  %s23_s18 = int_to_ptr.vmem [resolvable:$true] %s22_s18 }
   0xc   :  { %s3864_s22 = smov 48   ;;  %s3865_s23 = smov [#allocation7]  }
   0xd   :  { %28 = dma.hbm_to_vmem [thread:$0]  %s21_s16, 1536, %s23_s18, [#allocation3], %s3863_s21, %s3863_s21, %s3864_s22  }
   0xe   :  { %s49_s24 = sshll.u32 %s3865_s23, 4  ;;  %s72_s27 = sshll.u32 %s3994_s5, 4  ;;  %s50_s24 = int_to_ptr.vmem [resolvable:$true] %s49_s24  ;;  %s73_s27 = int_to_ptr.hbm [resolvable:$true] %s72_s27 }
   0xf   :  { %52 = dma.hbm_to_vmem [thread:$0]  %s48_s20, 64, %s50_s24, [#allocation6]  }
  0x10   :  { %s3866_s0 = smov [#allocation10]   ;;  %s3867_s29 = smov 64  }
  0x11   :  { %s74_s28 = sshll.u32 %s3866_s0, 4  ;;  %s3868_s30 = smov 4   ;;  %s75_s28 = int_to_ptr.vmem [resolvable:$true] %s74_s28 }
  0x12   :  { %80 = dma.hbm_to_vmem [thread:$0]  %s73_s27, 2048, %s75_s28, [#allocation9], %s3867_s29, %s3867_s29, %s3868_s30  }
  0x13   :  { %3848 = dma.done.wait [#allocation3], 1536  }
  0x14   :  { %3849 = vsyncadd [#allocation3], 4294965760 }
  0x15   :  { %3850 = dma.done.wait [#allocation6], 24640  }
  0x16   :  { %3851 = vsyncadd [#allocation6], 4294942656 }
  0x17   :  { %3852 = dma.done.wait [#allocation9], 10240  }
  0x18   :  { %3853 = vsyncadd [#allocation9], 4294957056  ;;  %v2438_v0 = vld [vmem:[#allocation5 + $0xe0] sm:$0xf]  ;;  %v3442_v1 = vld [vmem:[#allocation5 + $0xec] sm:$0xf0] }
  0x19   :  { %v2566_v2 = vld [vmem:[#allocation5 + $0x1e0] sm:$0xf]  ;;  %v2439_v3 = vor.u32 %v3442_v1, %v2438_v0  ;;  %v3474_v4 = vld [vmem:[#allocation5 + $0x1ec] sm:$0xf0]  ;;  %s3869_s9 = smov [#allocation11]   ;;  %s2309_s13 = sshll.u32 %s3996_s7, 4  ;;  %s2310_s13 = int_to_ptr.hbm [resolvable:$true] %s2309_s13 }
  0x1a   :  { %v2694_v5 = vld [vmem:[#allocation5 + $0x2e0] sm:$0xf]  ;;  %v3506_v6 = vld [vmem:[#allocation5 + $0x2ec] sm:$0xf0]  ;;  %v2567_v7 = vor.u32 %v3474_v4, %v2566_v2  ;;  %s2307_s10 = sshll.u32 %s3869_s9, 4  ;;  %s2308_s10 = int_to_ptr.vmem [resolvable:$true] %s2307_s10 }
  0x1b   :  { %v2695_v8 = vor.u32 %v3506_v6, %v2694_v5  ;;  %v2822_v9 = vld [vmem:[#allocation5 + $0x3e0] sm:$0xf]  ;;  %v3538_v10 = vld [vmem:[#allocation5 + $0x3ec] sm:$0xf0]  ;;  %1283 = vmatpush.bf16.msra.mxu0 %v2439_v3 }
  0x1c   :  { %v2422_v11 = vld [vmem:[#allocation5 + $0xc0] sm:$0xf]  ;;  %v2823_v12 = vor.u32 %v3538_v10, %v2822_v9  ;;  %v3438_v13 = vld [vmem:[#allocation5 + $0xcc] sm:$0xf0]  ;;  %1297 = vmatpush.bf16.msra.mxu1 %v2567_v7 }
  0x1d   :  { %v2550_v14 = vld [vmem:[#allocation5 + $0x1c0] sm:$0xf]  ;;  %v3470_v15 = vld [vmem:[#allocation5 + $0x1cc] sm:$0xf0]  ;;  %1311 = vmatpush.bf16.msra.mxu2 %v2695_v8  ;;  %v2423_v16 = vor.u32 %v3438_v13, %v2422_v11 }
  0x1e   :  { %v2551_v17 = vor.u32 %v3470_v15, %v2550_v14  ;;  %v2678_v18 = vld [vmem:[#allocation5 + $0x2c0] sm:$0xf]  ;;  %v3502_v19 = vld [vmem:[#allocation5 + $0x2cc] sm:$0xf0]  ;;  %1325 = vmatpush.bf16.msra.mxu3 %v2823_v12 }
  0x1f   :  { %v2806_v20 = vld [vmem:[#allocation5 + $0x3c0] sm:$0xf]  ;;  %v2679_v21 = vor.u32 %v3502_v19, %v2678_v18  ;;  %v3534_v22 = vld [vmem:[#allocation5 + $0x3cc] sm:$0xf0]  ;;  %1284 = vmatpush.bf16.msra.mxu0 %v2423_v16 }
  0x20   :  { %v2406_v23 = vld [vmem:[#allocation5 + $0xa0] sm:$0xf]  ;;  %v3434_v24 = vld [vmem:[#allocation5 + $0xac] sm:$0xf0]  ;;  %v2807_v25 = vor.u32 %v3534_v22, %v2806_v20  ;;  %1298 = vmatpush.bf16.msra.mxu1 %v2551_v17 }
  0x21   :  { %v2534_v26 = vld [vmem:[#allocation5 + $0x1a0] sm:$0xf]  ;;  %v3466_v27 = vld [vmem:[#allocation5 + $0x1ac] sm:$0xf0]  ;;  %v2407_v29 = vor.u32 %v3434_v24, %v2406_v23  ;;  %1312 = vmatpush.bf16.msra.mxu2 %v2679_v21 }
  0x22   :  { %v2662_v28 = vld [vmem:[#allocation5 + $0x2a0] sm:$0xf]  ;;  %v3498_v30 = vld [vmem:[#allocation5 + $0x2ac] sm:$0xf0]  ;;  %v2535_v33 = vor.u32 %v3466_v27, %v2534_v26  ;;  %1326 = vmatpush.bf16.msra.mxu3 %v2807_v25 }
  0x23   :  { %v2790_v31 = vld [vmem:[#allocation5 + $0x3a0] sm:$0xf]  ;;  %v3530_v32 = vld [vmem:[#allocation5 + $0x3ac] sm:$0xf0]  ;;  %v2663_v34 = vor.u32 %v3498_v30, %v2662_v28  ;;  %1285 = vmatpush.bf16.msra.mxu0 %v2407_v29 }
  0x24   :  { %v2390_v35 = vld [vmem:[#allocation5 + $0x80] sm:$0xf]  ;;  %v3430_v36 = vld [vmem:[#allocation5 + $0x8c] sm:$0xf0]  ;;  %v2791_v38 = vor.u32 %v3530_v32, %v2790_v31  ;;  %1299 = vmatpush.bf16.msra.mxu1 %v2535_v33  ;;  %v3440_v33 = vld [vmem:[#allocation5 + $0xe4] sm:$0xf] }
  0x25   :  { %v2518_v37 = vld [vmem:[#allocation5 + $0x180] sm:$0xf]  ;;  %v3462_v39 = vld [vmem:[#allocation5 + $0x18c] sm:$0xf0]  ;;  %v2391_v44 = vor.u32 %v3430_v36, %v2390_v35  ;;  %1313 = vmatpush.bf16.msra.mxu2 %v2663_v34  ;;  %v2440_v34 = vld [vmem:[#allocation5 + $0xf0] sm:$0xf0] }
  0x26   :  { %v2646_v40 = vld [vmem:[#allocation5 + $0x280] sm:$0xf]  ;;  %v3494_v41 = vld [vmem:[#allocation5 + $0x28c] sm:$0xf0]  ;;  %v2519_v45 = vor.u32 %v3462_v39, %v2518_v37  ;;  %1327 = vmatpush.bf16.msra.mxu3 %v2791_v38  ;;  %v3472_v37 = vld [vmem:[#allocation5 + $0x1e4] sm:$0xf] }
  0x27   :  { %v2774_v42 = vld [vmem:[#allocation5 + $0x380] sm:$0xf]  ;;  %v3526_v43 = vld [vmem:[#allocation5 + $0x38c] sm:$0xf0]  ;;  %v2647_v46 = vor.u32 %v3494_v41, %v2646_v40  ;;  %1286 = vmatpush.bf16.msra.mxu0 %v2391_v44  ;;  %v2568_v38 = vld [vmem:[#allocation5 + $0x1f0] sm:$0xf0] }
  0x28   :  { %v2374_v47 = vld [vmem:[#allocation5 + $0x60] sm:$0xf]  ;;  %v3426_v48 = vld [vmem:[#allocation5 + $0x6c] sm:$0xf0]  ;;  %v2775_v50 = vor.u32 %v3526_v43, %v2774_v42  ;;  %1300 = vmatpush.bf16.msra.mxu1 %v2519_v45  ;;  %v2443_v43 = vor.u32 %v3440_v33, %v2440_v34  ;;  %v2376_v33 = vld [vmem:[#allocation5 + $0x70] sm:$0xf0] }
  0x29   :  { %v2502_v49 = vld [vmem:[#allocation5 + $0x160] sm:$0xf]  ;;  %v3458_v51 = vld [vmem:[#allocation5 + $0x16c] sm:$0xf0]  ;;  %v2375_v56 = vor.u32 %v3426_v48, %v2374_v47  ;;  %1314 = vmatpush.bf16.msra.mxu2 %v2647_v46  ;;  %v2571_v47 = vor.u32 %v3472_v37, %v2568_v38  ;;  %v3436_v48 = vld [vmem:[#allocation5 + $0xc4] sm:$0xf] }
  0x2a   :  { %v2630_v52 = vld [vmem:[#allocation5 + $0x260] sm:$0xf]  ;;  %v3490_v53 = vld [vmem:[#allocation5 + $0x26c] sm:$0xf0]  ;;  %v2503_v57 = vor.u32 %v3458_v51, %v2502_v49  ;;  %1328 = vmatpush.bf16.msra.mxu3 %v2775_v50  ;;  %v2424_v49 = vld [vmem:[#allocation5 + $0xd0] sm:$0xf0] }
  0x2b   :  { %v2758_v54 = vld [vmem:[#allocation5 + $0x360] sm:$0xf]  ;;  %v3522_v55 = vld [vmem:[#allocation5 + $0x36c] sm:$0xf0]  ;;  %v2631_v58 = vor.u32 %v3490_v53, %v2630_v52  ;;  %1287 = vmatpush.bf16.msra.mxu0 %v2375_v56  ;;  %v3468_v50 = vld [vmem:[#allocation5 + $0x1c4] sm:$0xf] }
  0x2c   :  { %v2358_v59 = vld [vmem:[#allocation5 + $0x40] sm:$0xf]  ;;  %v3422_v60 = vld [vmem:[#allocation5 + $0x4c] sm:$0xf0]  ;;  %v2759_v62 = vor.u32 %v3522_v55, %v2758_v54  ;;  %1301 = vmatpush.bf16.msra.mxu1 %v2503_v57  ;;  %v2552_v51 = vld [vmem:[#allocation5 + $0x1d0] sm:$0xf0] }
  0x2d   :  { %v2486_v61 = vld [vmem:[#allocation5 + $0x140] sm:$0xf]  ;;  %v3454_v63 = vld [vmem:[#allocation5 + $0x14c] sm:$0xf0]  ;;  %v2359_v4 = vor.u32 %v3422_v60, %v2358_v59  ;;  %1315 = vmatpush.bf16.msra.mxu2 %v2631_v58  ;;  %v2427_v59 = vor.u32 %v3436_v48, %v2424_v49  ;;  %v3456_v34 = vld [vmem:[#allocation5 + $0x164] sm:$0xf] }
  0x2e   :  { %v2614_v0 = vld [vmem:[#allocation5 + $0x240] sm:$0xf]  ;;  %v3486_v1 = vld [vmem:[#allocation5 + $0x24c] sm:$0xf0]  ;;  %v2487_v5 = vor.u32 %v3454_v63, %v2486_v61  ;;  %1329 = vmatpush.bf16.msra.mxu3 %v2759_v62  ;;  %v3432_v62 = vld [vmem:[#allocation5 + $0xa4] sm:$0xf]  ;;  %v2555_v63 = vor.u32 %v3468_v50, %v2552_v51 }
  0x2f   :  { %v2742_v2 = vld [vmem:[#allocation5 + $0x340] sm:$0xf]  ;;  %v3518_v3 = vld [vmem:[#allocation5 + $0x34c] sm:$0xf0]  ;;  %v2615_v6 = vor.u32 %v3486_v1, %v2614_v0  ;;  %1288 = vmatpush.bf16.msra.mxu0 %v2359_v4  ;;  %v2408_v0 = vld [vmem:[#allocation5 + $0xb0] sm:$0xf0] }
  0x30   :  { %v2342_v7 = vld [vmem:[#allocation5 + $0x20] sm:$0xf]  ;;  %v3418_v8 = vld [vmem:[#allocation5 + $0x2c] sm:$0xf0]  ;;  %v2743_v10 = vor.u32 %v3518_v3, %v2742_v2  ;;  %1302 = vmatpush.bf16.msra.mxu1 %v2487_v5  ;;  %v104_v1 = vld [vmem:[#allocation2 + $0x8] sm:$0xff] }
  0x31   :  { %v2470_v9 = vld [vmem:[#allocation5 + $0x120] sm:$0xf]  ;;  %v3450_v11 = vld [vmem:[#allocation5 + $0x12c] sm:$0xf0]  ;;  %v2343_v16 = vor.u32 %v3418_v8, %v2342_v7  ;;  %1316 = vmatpush.bf16.msra.mxu2 %v2615_v6  ;;  %v110_v2 = vld [vmem:[#allocation2 + $0x38] sm:$0xff] }
  0x32   :  { %v2598_v12 = vld [vmem:[#allocation5 + $0x220] sm:$0xf]  ;;  %v3482_v13 = vld [vmem:[#allocation5 + $0x22c] sm:$0xf0]  ;;  %v2471_v19 = vor.u32 %v3450_v11, %v2470_v9  ;;  %1330 = vmatpush.bf16.msra.mxu3 %v2743_v10  ;;  %v3464_v3 = vld [vmem:[#allocation5 + $0x1a4] sm:$0xf]  ;;  %v3931_v6 = vpack.c.bf16 %v110_v2, %v104_v1 }
  0x33   :  { %v2726_v14 = vld [vmem:[#allocation5 + $0x320] sm:$0xf]  ;;  %v3514_v15 = vld [vmem:[#allocation5 + $0x32c] sm:$0xf0]  ;;  %v2599_v20 = vor.u32 %v3482_v13, %v2598_v12  ;;  %1289 = vmatpush.bf16.msra.mxu0 %v2343_v16  ;;  %v2536_v4 = vld [vmem:[#allocation5 + $0x1b0] sm:$0xf0]  ;;  %v2411_v12 = vor.u32 %v3432_v62, %v2408_v0 }
  0x34   :  { %v2326_v17 = vld [vmem:[#allocation5] sm:$0xf]  ;;  %v3414_v18 = vld [vmem:[#allocation5 + $0xc] sm:$0xf0]  ;;  %v2727_v24 = vor.u32 %v3514_v15, %v2726_v14  ;;  %1303 = vmatpush.bf16.msra.mxu1 %v2471_v19  ;;  %v3428_v13 = vld [vmem:[#allocation5 + $0x84] sm:$0xf]  ;;  %v2539_v16 = vor.u32 %v3464_v3, %v2536_v4 }
  0x35   :  { %v2454_v21 = vld [vmem:[#allocation5 + $0x100] sm:$0xf]  ;;  %v3446_v22 = vld [vmem:[#allocation5 + $0x10c] sm:$0xf0]  ;;  %v2327_v31 = vor.u32 %v3414_v18, %v2326_v17  ;;  %1317 = vmatpush.bf16.msra.mxu2 %v2599_v20  ;;  %v2392_v14 = vld [vmem:[#allocation5 + $0x90] sm:$0xf0] }
  0x36   :  { %v2582_v23 = vld [vmem:[#allocation5 + $0x200] sm:$0xf]  ;;  %v3478_v25 = vld [vmem:[#allocation5 + $0x20c] sm:$0xf0]  ;;  %v2455_v35 = vor.u32 %v3446_v22, %v2454_v21  ;;  %1331 = vmatpush.bf16.msra.mxu3 %v2727_v24  ;;  %v106_v18 = vld [vmem:[#allocation2 + $0x18] sm:$0xff] }
  0x37   :  { %v2710_v26 = vld [vmem:[#allocation5 + $0x300] sm:$0xf]  ;;  %v3510_v27 = vld [vmem:[#allocation5 + $0x30c] sm:$0xf0]  ;;  %v2583_v36 = vor.u32 %v3478_v25, %v2582_v23  ;;  %1290 = vmatpush.bf16.msra.mxu0 %v2327_v31  ;;  %v112_v19 = vld [vmem:[#allocation2 + $0x48] sm:$0xff] }
  0x38   :  { %v2950_v28 = vld [vmem:[#allocation5 + $0x4e0] sm:$0xf]  ;;  %v3570_v29 = vld [vmem:[#allocation5 + $0x4ec] sm:$0xf0]  ;;  %v2711_v39 = vor.u32 %v3510_v27, %v2710_v26  ;;  %1304 = vmatpush.bf16.msra.mxu1 %v2455_v35  ;;  %v3460_v20 = vld [vmem:[#allocation5 + $0x184] sm:$0xf]  ;;  %v3936_v23 = vpack.c.bf16 %v112_v19, %v106_v18  ;;  %v2395_v26 = vor.u32 %v3428_v13, %v2392_v14 }
  0x39   :  { %v3078_v30 = vld [vmem:[#allocation5 + $0x5e0] sm:$0xf]  ;;  %v3602_v32 = vld [vmem:[#allocation5 + $0x5ec] sm:$0xf0]  ;;  %v2951_v40 = vor.u32 %v3570_v29, %v2950_v28  ;;  %1318 = vmatpush.bf16.msra.mxu2 %v2583_v36  ;;  %v2520_v21 = vld [vmem:[#allocation5 + $0x190] sm:$0xf0] }
  0x3a   :  { %v2934_v41 = vld [vmem:[#allocation5 + $0x4c0] sm:$0xf]  ;;  %v3079_v42 = vor.u32 %v3602_v32, %v3078_v30  ;;  %v3566_v44 = vld [vmem:[#allocation5 + $0x4cc] sm:$0xf0]  ;;  %1332 = vmatpush.bf16.msra.mxu3 %v2711_v39  ;;  %v2523_v30 = vor.u32 %v3460_v20, %v2520_v21  ;;  %v3424_v32 = vld [vmem:[#allocation5 + $0x64] sm:$0xf] }
  0x3b   :  { %v3062_v45 = vld [vmem:[#allocation5 + $0x5c0] sm:$0xf]  ;;  %v3598_v46 = vld [vmem:[#allocation5 + $0x5cc] sm:$0xf0]  ;;  %1339 = vmatpush.bf16.msrb.mxu0 %v2951_v40  ;;  %v2935_v54 = vor.u32 %v3566_v44, %v2934_v41  ;;  %1305 = vmatmul.bf16.vlgmr.msra.gmra.mxu1 %v3931_v6  ;;  %v2504_v35 = vld [vmem:[#allocation5 + $0x170] sm:$0xf0]  ;;  %v2379_v38 = vor.u32 %v3424_v32, %v2376_v33 }
  0x3c   :  { %v103_v52 = vld [vmem:[#allocation2] sm:$0xff]  ;;  %v109_v53 = vld [vmem:[#allocation2 + $0x30] sm:$0xff]  ;;  %1353 = vmatpush.bf16.msrb.mxu1 %v3079_v42  ;;  %v3063_v58 = vor.u32 %v3598_v46, %v3062_v45  ;;  %v2507_v42 = vor.u32 %v3456_v34, %v2504_v35 }
  0x3d   :  { %v2918_v55 = vld [vmem:[#allocation5 + $0x4a0] sm:$0xf]  ;;  %v3562_v56 = vld [vmem:[#allocation5 + $0x4ac] sm:$0xf0]  ;;  %v3928_v57 = vpack.c.bf16 %v109_v53, %v103_v52  ;;  %1367 = vmatpush.bf16.msrb.mxu2 %v2443_v43  ;;  %1333 = vmatmul.bf16.vlgmr.msra.gmra.mxu3 %v3936_v23  ;;  %v3420_v44 = vld [vmem:[#allocation5 + $0x44] sm:$0xf] }
  0x3e   :  { %v3046_v60 = vld [vmem:[#allocation5 + $0x5a0] sm:$0xf]  ;;  %v3594_v61 = vld [vmem:[#allocation5 + $0x5ac] sm:$0xf0]  ;;  %1381 = vmatpush.bf16.msrb.mxu3 %v2571_v47  ;;  %v2919_v7 = vor.u32 %v3562_v56, %v2918_v55  ;;  %v2360_v45 = vld [vmem:[#allocation5 + $0x50] sm:$0xf0] }
  0x3f   :  { %1291 = vmatmul.bf16.vlgmr.msra.gmra.mxu0 %v3928_v57  ;;  %v2902_v5 = vld [vmem:[#allocation5 + $0x480] sm:$0xf]  ;;  %v3558_v8 = vld [vmem:[#allocation5 + $0x48c] sm:$0xf0]  ;;  %v3047_v11 = vor.u32 %v3594_v61, %v3046_v60  ;;  %v3452_v46 = vld [vmem:[#allocation5 + $0x144] sm:$0xf]  ;;  %v2363_v50 = vor.u32 %v3420_v44, %v2360_v45 }
  0x40   :  { %1340 = vmatpush.bf16.msrb.mxu0 %v2935_v54  ;;  %v3030_v9 = vld [vmem:[#allocation5 + $0x580] sm:$0xf]  ;;  %v3590_v10 = vld [vmem:[#allocation5 + $0x58c] sm:$0xf0]  ;;  %1354 = vmatpush.bf16.msrb.mxu1 %v3063_v58  ;;  %v2903_v24 = vor.u32 %v3558_v8, %v2902_v5  ;;  %v2488_v47 = vld [vmem:[#allocation5 + $0x150] sm:$0xf0] }
  0x41   :  { %1368 = vmatpush.bf16.msrb.mxu2 %v2427_v59  ;;  %v105_v15 = vld [vmem:[#allocation2 + $0x10] sm:$0xff]  ;;  %v111_v17 = vld [vmem:[#allocation2 + $0x40] sm:$0xff]  ;;  %v3031_v25 = vor.u32 %v3590_v10, %v3030_v9  ;;  %v2491_v54 = vor.u32 %v3452_v46, %v2488_v47 }
  0x42   :  { %1382 = vmatpush.bf16.msrb.mxu3 %v2555_v63  ;;  %v3934_v22 = vpack.c.bf16 %v111_v17, %v105_v15  ;;  %v2886_v27 = vld [vmem:[#allocation5 + $0x460] sm:$0xf]  ;;  %v3554_v28 = vld [vmem:[#allocation5 + $0x46c] sm:$0xf0]  ;;  %v3416_v56 = vld [vmem:[#allocation5 + $0x24] sm:$0xf] }
  0x43   :  { %v3014_v29 = vld [vmem:[#allocation5 + $0x560] sm:$0xf]  ;;  %v3586_v31 = vld [vmem:[#allocation5 + $0x56c] sm:$0xf0]  ;;  %v2887_v36 = vor.u32 %v3554_v28, %v2886_v27  ;;  %v2344_v58 = vld [vmem:[#allocation5 + $0x30] sm:$0xf0] }
  0x44   :  { %1341 = vmatpush.bf16.msrb.mxu0 %v2919_v7  ;;  %1355 = vmatpush.bf16.msrb.mxu1 %v3047_v11  ;;  %v3015_v37 = vor.u32 %v3586_v31, %v3014_v29  ;;  %v2870_v39 = vld [vmem:[#allocation5 + $0x440] sm:$0xf]  ;;  %v3550_v40 = vld [vmem:[#allocation5 + $0x44c] sm:$0xf0]  ;;  %v3448_v59 = vld [vmem:[#allocation5 + $0x124] sm:$0xf]  ;;  %v2347_v2 = vor.u32 %v3416_v56, %v2344_v58 }
  0x45   :  { %1369 = vmatpush.bf16.msrb.mxu2 %v2411_v12  ;;  %v2998_v41 = vld [vmem:[#allocation5 + $0x540] sm:$0xf]  ;;  %v3582_v43 = vld [vmem:[#allocation5 + $0x54c] sm:$0xf0]  ;;  %v2871_v48 = vor.u32 %v3550_v40, %v2870_v39  ;;  %v2472_v60 = vld [vmem:[#allocation5 + $0x130] sm:$0xf0] }
  0x46   :  { %1383 = vmatpush.bf16.msrb.mxu3 %v2539_v16  ;;  %1319 = vmatmul.bf16.vlgmr.msra.gmra.mxu2 %v3934_v22  ;;  %v2999_v49 = vor.u32 %v3582_v43, %v2998_v41  ;;  %v2854_v51 = vld [vmem:[#allocation5 + $0x420] sm:$0xf]  ;;  %v3546_v52 = vld [vmem:[#allocation5 + $0x42c] sm:$0xf0]  ;;  %v3412_v4 = vld [vmem:[#allocation5 + $0x4] sm:$0xf]  ;;  %v2475_v7 = vor.u32 %v3448_v59, %v2472_v60 }
  0x47   :  { %v2982_v53 = vld [vmem:[#allocation5 + $0x520] sm:$0xf]  ;;  %v3578_v55 = vld [vmem:[#allocation5 + $0x52c] sm:$0xf0]  ;;  %v2855_v61 = vor.u32 %v3546_v52, %v2854_v51  ;;  %v2328_v5 = vld [vmem:[#allocation5 + $0x10] sm:$0xf0] }
  0x48   :  { %1342 = vmatpush.bf16.msrb.mxu0 %v2903_v24  ;;  %1356 = vmatpush.bf16.msrb.mxu1 %v3031_v25  ;;  %v2838_v62 = vld [vmem:[#allocation5 + $0x400] sm:$0xf]  ;;  %v3542_v63 = vld [vmem:[#allocation5 + $0x40c] sm:$0xf0]  ;;  %v2983_v1 = vor.u32 %v3578_v55, %v2982_v53  ;;  %v3444_v8 = vld [vmem:[#allocation5 + $0x104] sm:$0xf]  ;;  %v2331_v19 = vor.u32 %v3412_v4, %v2328_v5 }
  0x49   :  { %1370 = vmatpush.bf16.msrb.mxu2 %v2395_v26  ;;  %v2966_v0 = vld [vmem:[#allocation5 + $0x500] sm:$0xf]  ;;  %v3574_v3 = vld [vmem:[#allocation5 + $0x50c] sm:$0xf0]  ;;  %v2456_v9 = vld [vmem:[#allocation5 + $0x110] sm:$0xf0]  ;;  %v2839_v14 = vor.u32 %v3542_v63, %v2838_v62 }
  0x4a   :  { %1384 = vmatpush.bf16.msrb.mxu3 %v2523_v30  ;;  %v3504_v10 = vld [vmem:[#allocation5 + $0x2e4] sm:$0xf]  ;;  %v2696_v11 = vld [vmem:[#allocation5 + $0x2f0] sm:$0xf0]  ;;  %v2967_v18 = vor.u32 %v3574_v3, %v2966_v0  ;;  %v2459_v25 = vor.u32 %v3444_v8, %v2456_v9  ;;  %v108_v27 = vld [vmem:[#allocation2 + $0x28] sm:$0xff] }
  0x4b   :  { %v3536_v12 = vld [vmem:[#allocation5 + $0x3e4] sm:$0xf]  ;;  %v2824_v13 = vld [vmem:[#allocation5 + $0x3f0] sm:$0xf0]  ;;  %v2699_v26 = vor.u32 %v3504_v10, %v2696_v11  ;;  %v114_v28 = vld [vmem:[#allocation2 + $0x58] sm:$0xff] }
  0x4c   :  { %1343 = vmatpush.bf16.msrb.mxu0 %v2887_v36  ;;  %1357 = vmatpush.bf16.msrb.mxu1 %v3015_v37  ;;  %v3568_v15 = vld [vmem:[#allocation5 + $0x4e4] sm:$0xf]  ;;  %v2952_v16 = vld [vmem:[#allocation5 + $0x4f0] sm:$0xf0]  ;;  %v2827_v29 = vor.u32 %v3536_v12, %v2824_v13  ;;  %v3942_v39 = vpack.c.bf16 %v114_v28, %v108_v27 }
  0x4d   :  { %1371 = vmatpush.bf16.msrb.mxu2 %v2379_v38  ;;  %v3600_v17 = vld [vmem:[#allocation5 + $0x5e4] sm:$0xf]  ;;  %v3080_v20 = vld [vmem:[#allocation5 + $0x5f0] sm:$0xf0]  ;;  %v2955_v30 = vor.u32 %v3568_v15, %v2952_v16 }
  0x4e   :  { %1385 = vmatpush.bf16.msrb.mxu3 %v2507_v42  ;;  %v107_v21 = vld [vmem:[#allocation2 + $0x20] sm:$0xff]  ;;  %v113_v24 = vld [vmem:[#allocation2 + $0x50] sm:$0xff]  ;;  %v3083_v34 = vor.u32 %v3600_v17, %v3080_v20 }
  0x4f   :  { %v3500_v31 = vld [vmem:[#allocation5 + $0x2c4] sm:$0xf]  ;;  %v2680_v32 = vld [vmem:[#allocation5 + $0x2d0] sm:$0xf0]  ;;  %v3940_v35 = vpack.c.bf16 %v113_v24, %v107_v21 }
  0x50   :  { %1344 = vmatpush.bf16.msrb.mxu0 %v2871_v48  ;;  %1358 = vmatpush.bf16.msrb.mxu1 %v2999_v49  ;;  %v3532_v33 = vld [vmem:[#allocation5 + $0x3c4] sm:$0xf]  ;;  %v2808_v36 = vld [vmem:[#allocation5 + $0x3d0] sm:$0xf0]  ;;  %v2683_v42 = vor.u32 %v3500_v31, %v2680_v32 }
  0x51   :  { %1372 = vmatpush.bf16.msrb.mxu2 %v2363_v50  ;;  %v3564_v37 = vld [vmem:[#allocation5 + $0x4c4] sm:$0xf]  ;;  %v2936_v38 = vld [vmem:[#allocation5 + $0x4d0] sm:$0xf0]  ;;  %v2811_v43 = vor.u32 %v3532_v33, %v2808_v36 }
  0x52   :  { %1386 = vmatpush.bf16.msrb.mxu3 %v2491_v54  ;;  %v3596_v40 = vld [vmem:[#allocation5 + $0x5c4] sm:$0xf]  ;;  %v3064_v41 = vld [vmem:[#allocation5 + $0x5d0] sm:$0xf0]  ;;  %v2939_v44 = vor.u32 %v3564_v37, %v2936_v38 }
  0x53   :  { %v3496_v45 = vld [vmem:[#allocation5 + $0x2a4] sm:$0xf]  ;;  %v2664_v46 = vld [vmem:[#allocation5 + $0x2b0] sm:$0xf0]  ;;  %v3067_v48 = vor.u32 %v3596_v40, %v3064_v41 }
  0x54   :  { %1345 = vmatpush.bf16.msrb.mxu0 %v2855_v61  ;;  %1359 = vmatpush.bf16.msrb.mxu1 %v2983_v1  ;;  %v3528_v47 = vld [vmem:[#allocation5 + $0x3a4] sm:$0xf]  ;;  %v2792_v49 = vld [vmem:[#allocation5 + $0x3b0] sm:$0xf0]  ;;  %v2667_v54 = vor.u32 %v3496_v45, %v2664_v46 }
  0x55   :  { %1373 = vmatpush.bf16.msrb.mxu2 %v2347_v2  ;;  %v3560_v50 = vld [vmem:[#allocation5 + $0x4a4] sm:$0xf]  ;;  %v2920_v51 = vld [vmem:[#allocation5 + $0x4b0] sm:$0xf0]  ;;  %v2795_v55 = vor.u32 %v3528_v47, %v2792_v49 }
  0x56   :  { %1387 = vmatpush.bf16.msrb.mxu3 %v2475_v7  ;;  %v3592_v52 = vld [vmem:[#allocation5 + $0x5a4] sm:$0xf]  ;;  %v3048_v53 = vld [vmem:[#allocation5 + $0x5b0] sm:$0xf0]  ;;  %v2923_v56 = vor.u32 %v3560_v50, %v2920_v51 }
  0x57   :  { %v3492_v58 = vld [vmem:[#allocation5 + $0x284] sm:$0xf]  ;;  %v2648_v59 = vld [vmem:[#allocation5 + $0x290] sm:$0xf0]  ;;  %v3051_v61 = vor.u32 %v3592_v52, %v3048_v53 }
  0x58   :  { %1346 = vmatpush.bf16.msrb.mxu0 %v2839_v14  ;;  %1360 = vmatpush.bf16.msrb.mxu1 %v2967_v18  ;;  %v3524_v60 = vld [vmem:[#allocation5 + $0x384] sm:$0xf]  ;;  %v2776_v62 = vld [vmem:[#allocation5 + $0x390] sm:$0xf0]  ;;  %v2651_v3 = vor.u32 %v3492_v58, %v2648_v59  ;;  %v3443_v58 = vld [vmem:[#allocation5 + $0xf4] sm:$0xf0] }
  0x59   :  { %1374 = vmatpush.bf16.msrb.mxu2 %v2331_v19  ;;  %v3556_v63 = vld [vmem:[#allocation5 + $0x484] sm:$0xf]  ;;  %v2904_v0 = vld [vmem:[#allocation5 + $0x490] sm:$0xf0]  ;;  %v2779_v4 = vor.u32 %v3524_v60, %v2776_v62  ;;  %v2574_v59 = vld [vmem:[#allocation5 + $0x1e8] sm:$0xf] }
  0x5a   :  { %1388 = vmatpush.bf16.msrb.mxu3 %v2459_v25  ;;  %v3588_v1 = vld [vmem:[#allocation5 + $0x584] sm:$0xf]  ;;  %v3032_v2 = vld [vmem:[#allocation5 + $0x590] sm:$0xf0]  ;;  %v2907_v5 = vor.u32 %v3556_v63, %v2904_v0  ;;  %v2702_v62 = vld [vmem:[#allocation5 + $0x2e8] sm:$0xf] }
  0x5b   :  { %1347 = vmatmul.bf16.vlgmr.msrb.gmra.mxu0 %v3940_v35  ;;  %1361 = vmatmul.bf16.vlgmr.msrb.gmra.mxu1 %v3942_v39  ;;  %v3488_v7 = vld [vmem:[#allocation5 + $0x264] sm:$0xf]  ;;  %v2632_v8 = vld [vmem:[#allocation5 + $0x270] sm:$0xf0]  ;;  %v3035_v10 = vor.u32 %v3588_v1, %v3032_v2  ;;  %v3507_v63 = vld [vmem:[#allocation5 + $0x2f4] sm:$0xf0] }
  0x5c   :  { %1395 = vmatpush.bf16.msra.mxu0 %v2699_v26  ;;  %1409 = vmatpush.bf16.msra.mxu1 %v2827_v29  ;;  %v3520_v9 = vld [vmem:[#allocation5 + $0x364] sm:$0xf]  ;;  %v2760_v11 = vld [vmem:[#allocation5 + $0x370] sm:$0xf0]  ;;  %v2635_v16 = vor.u32 %v3488_v7, %v2632_v8  ;;  %v2830_v2 = vld [vmem:[#allocation5 + $0x3e8] sm:$0xf]  ;;  %v2703_v8 = vor.u32 %v3507_v63, %v2702_v62 }
  0x5d   :  { %1423 = vmatpush.bf16.msra.mxu2 %v2955_v30  ;;  %1389 = vmatmul.bf16.vlgmr.msrb.gmra.mxu3 %v3931_v6  ;;  %v3552_v12 = vld [vmem:[#allocation5 + $0x464] sm:$0xf]  ;;  %v2888_v13 = vld [vmem:[#allocation5 + $0x470] sm:$0xf0]  ;;  %v2763_v17 = vor.u32 %v3520_v9, %v2760_v11  ;;  %v2430_v9 = vld [vmem:[#allocation5 + $0xc8] sm:$0xf] }
  0x5e   :  { %1437 = vmatpush.bf16.msra.mxu3 %v3083_v34  ;;  %1375 = vmatmul.bf16.vlgmr.msrb.gmra.mxu2 %v3928_v57  ;;  %v3584_v14 = vld [vmem:[#allocation5 + $0x564] sm:$0xf]  ;;  %v3016_v15 = vld [vmem:[#allocation5 + $0x570] sm:$0xf0]  ;;  %v2891_v18 = vor.u32 %v3552_v12, %v2888_v13  ;;  %v2558_v11 = vld [vmem:[#allocation5 + $0x1c8] sm:$0xf] }
  0x5f   :  { %v3484_v19 = vld [vmem:[#allocation5 + $0x244] sm:$0xf]  ;;  %v2616_v20 = vld [vmem:[#allocation5 + $0x250] sm:$0xf0]  ;;  %v3019_v24 = vor.u32 %v3584_v14, %v3016_v15  ;;  %v3471_v13 = vld [vmem:[#allocation5 + $0x1d4] sm:$0xf0] }
  0x60   :  { %1396 = vmatpush.bf16.msra.mxu0 %v2683_v42  ;;  %1410 = vmatpush.bf16.msra.mxu1 %v2811_v43  ;;  %v3516_v21 = vld [vmem:[#allocation5 + $0x344] sm:$0xf]  ;;  %v2744_v25 = vld [vmem:[#allocation5 + $0x350] sm:$0xf0]  ;;  %v2619_v30 = vor.u32 %v3484_v19, %v2616_v20  ;;  %v2686_v14 = vld [vmem:[#allocation5 + $0x2c8] sm:$0xf]  ;;  %v2559_v19 = vor.u32 %v3471_v13, %v2558_v11 }
  0x61   :  { %1424 = vmatpush.bf16.msra.mxu2 %v2939_v44  ;;  %v3548_v26 = vld [vmem:[#allocation5 + $0x444] sm:$0xf]  ;;  %v2872_v27 = vld [vmem:[#allocation5 + $0x450] sm:$0xf0]  ;;  %v2747_v31 = vor.u32 %v3516_v21, %v2744_v25  ;;  %v3503_v15 = vld [vmem:[#allocation5 + $0x2d4] sm:$0xf0] }
  0x62   :  { %1438 = vmatpush.bf16.msra.mxu3 %v3067_v48  ;;  %v3580_v28 = vld [vmem:[#allocation5 + $0x544] sm:$0xf]  ;;  %v3000_v29 = vld [vmem:[#allocation5 + $0x550] sm:$0xf0]  ;;  %v2875_v32 = vor.u32 %v3548_v26, %v2872_v27  ;;  %v2687_v20 = vor.u32 %v3503_v15, %v2686_v14  ;;  %v2414_v21 = vld [vmem:[#allocation5 + $0xa8] sm:$0xf] }
  0x63   :  { %v3480_v33 = vld [vmem:[#allocation5 + $0x224] sm:$0xf]  ;;  %v2600_v34 = vld [vmem:[#allocation5 + $0x230] sm:$0xf0]  ;;  %v3003_v37 = vor.u32 %v3580_v28, %v3000_v29  ;;  %v2542_v25 = vld [vmem:[#allocation5 + $0x1a8] sm:$0xf] }
  0x64   :  { %1397 = vmatpush.bf16.msra.mxu0 %v2667_v54  ;;  %1411 = vmatpush.bf16.msra.mxu1 %v2795_v55  ;;  %v3512_v36 = vld [vmem:[#allocation5 + $0x324] sm:$0xf]  ;;  %v2728_v38 = vld [vmem:[#allocation5 + $0x330] sm:$0xf0]  ;;  %v2603_v44 = vor.u32 %v3480_v33, %v2600_v34  ;;  %v3467_v27 = vld [vmem:[#allocation5 + $0x1b4] sm:$0xf0] }
  0x65   :  { %1425 = vmatpush.bf16.msra.mxu2 %v2923_v56  ;;  %v3544_v40 = vld [vmem:[#allocation5 + $0x424] sm:$0xf]  ;;  %v2856_v41 = vld [vmem:[#allocation5 + $0x430] sm:$0xf0]  ;;  %v2731_v48 = vor.u32 %v3512_v36, %v2728_v38  ;;  %v2446_v56 = vld [vmem:[#allocation5 + $0xe8] sm:$0xf]  ;;  %v2543_v33 = vor.u32 %v3467_v27, %v2542_v25 }
  0x66   :  { %1439 = vmatpush.bf16.msra.mxu3 %v3051_v61  ;;  %v3576_v42 = vld [vmem:[#allocation5 + $0x524] sm:$0xf]  ;;  %v2984_v43 = vld [vmem:[#allocation5 + $0x530] sm:$0xf0]  ;;  %v2859_v49 = vor.u32 %v3544_v40, %v2856_v41  ;;  %v3475_v61 = vld [vmem:[#allocation5 + $0x1f4] sm:$0xf0] }
  0x67   :  { %v3476_v45 = vld [vmem:[#allocation5 + $0x204] sm:$0xf]  ;;  %v2584_v46 = vld [vmem:[#allocation5 + $0x210] sm:$0xf0]  ;;  %v2987_v53 = vor.u32 %v3576_v42, %v2984_v43  ;;  %v2575_v7 = vor.u32 %v3475_v61, %v2574_v59  ;;  %v2670_v28 = vld [vmem:[#allocation5 + $0x2a8] sm:$0xf] }
  0x68   :  { %1398 = vmatpush.bf16.msra.mxu0 %v2651_v3  ;;  %1412 = vmatpush.bf16.msra.mxu1 %v2779_v4  ;;  %v3508_v47 = vld [vmem:[#allocation5 + $0x304] sm:$0xf]  ;;  %v2712_v50 = vld [vmem:[#allocation5 + $0x310] sm:$0xf0]  ;;  %v2587_v60 = vor.u32 %v3476_v45, %v2584_v46  ;;  %v3539_v3 = vld [vmem:[#allocation5 + $0x3f4] sm:$0xf0] }
  0x69   :  { %1426 = vmatpush.bf16.msra.mxu2 %v2907_v5  ;;  %v3540_v51 = vld [vmem:[#allocation5 + $0x404] sm:$0xf]  ;;  %v2840_v52 = vld [vmem:[#allocation5 + $0x410] sm:$0xf0]  ;;  %v2715_v0 = vor.u32 %v3508_v47, %v2712_v50  ;;  %v2447_v5 = vor.u32 %v3443_v58, %v2446_v56  ;;  %v2831_v12 = vor.u32 %v3539_v3, %v2830_v2  ;;  %v3499_v29 = vld [vmem:[#allocation5 + $0x2b4] sm:$0xf0] }
  0x6a   :  { %1440 = vmatpush.bf16.msra.mxu3 %v3035_v10  ;;  %v3572_v54 = vld [vmem:[#allocation5 + $0x504] sm:$0xf]  ;;  %v2968_v55 = vld [vmem:[#allocation5 + $0x510] sm:$0xf0]  ;;  %v2843_v1 = vor.u32 %v3540_v51, %v2840_v52  ;;  %v3439_v10 = vld [vmem:[#allocation5 + $0xd4] sm:$0xf0]  ;;  %v2671_v34 = vor.u32 %v3499_v29, %v2670_v28 }
  0x6b   :  { %v2971_v4 = vor.u32 %v3572_v54, %v2968_v55  ;;  %v2398_v36 = vld [vmem:[#allocation5 + $0x88] sm:$0xf]  ;;  %v3463_v41 = vld [vmem:[#allocation5 + $0x194] sm:$0xf0] }
  0x6c   :  { %1399 = vmatpush.bf16.msra.mxu0 %v2635_v16  ;;  %1413 = vmatpush.bf16.msra.mxu1 %v2763_v17  ;;  %v2814_v16 = vld [vmem:[#allocation5 + $0x3c8] sm:$0xf]  ;;  %v3535_v17 = vld [vmem:[#allocation5 + $0x3d4] sm:$0xf0] }
  0x6d   :  { %1427 = vmatpush.bf16.msra.mxu2 %v2891_v18  ;;  %v2431_v18 = vor.u32 %v3439_v10, %v2430_v9  ;;  %v2815_v26 = vor.u32 %v3535_v17, %v2814_v16  ;;  %v2526_v38 = vld [vmem:[#allocation5 + $0x188] sm:$0xf]  ;;  %v3495_v43 = vld [vmem:[#allocation5 + $0x294] sm:$0xf0] }
  0x6e   :  { %1441 = vmatpush.bf16.msra.mxu3 %v3019_v24  ;;  %v3435_v24 = vld [vmem:[#allocation5 + $0xb4] sm:$0xf0]  ;;  %v2654_v42 = vld [vmem:[#allocation5 + $0x288] sm:$0xf]  ;;  %v2527_v47 = vor.u32 %v3463_v41, %v2526_v38  ;;  %v3441_v41 = vld [vmem:[#allocation5 + $0xec] sm:$0xf] }
  0x6f   :  { %v3527_v45 = vld [vmem:[#allocation5 + $0x394] sm:$0xf0]  ;;  %v2510_v51 = vld [vmem:[#allocation5 + $0x168] sm:$0xf] }
  0x70   :  { %1400 = vmatpush.bf16.msra.mxu0 %v2619_v30  ;;  %1414 = vmatpush.bf16.msra.mxu1 %v2747_v31  ;;  %v2798_v30 = vld [vmem:[#allocation5 + $0x3a8] sm:$0xf]  ;;  %v3531_v31 = vld [vmem:[#allocation5 + $0x3b4] sm:$0xf0] }
  0x71   :  { %1428 = vmatpush.bf16.msra.mxu2 %v2875_v32  ;;  %v2415_v32 = vor.u32 %v3435_v24, %v2414_v21  ;;  %v2799_v40 = vor.u32 %v3531_v31, %v2798_v30  ;;  %v3427_v50 = vld [vmem:[#allocation5 + $0x74] sm:$0xf0]  ;;  %v2638_v54 = vld [vmem:[#allocation5 + $0x268] sm:$0xf] }
  0x72   :  { %1442 = vmatpush.bf16.msra.mxu3 %v3003_v37  ;;  %v3431_v37 = vld [vmem:[#allocation5 + $0x94] sm:$0xf0]  ;;  %v2766_v56 = vld [vmem:[#allocation5 + $0x368] sm:$0xf] }
  0x73   :  { %v2399_v46 = vor.u32 %v3431_v37, %v2398_v36  ;;  %v3491_v55 = vld [vmem:[#allocation5 + $0x274] sm:$0xf0]  ;;  %v2366_v62 = vld [vmem:[#allocation5 + $0x48] sm:$0xf] }
  0x74   :  { %1401 = vmatpush.bf16.msra.mxu0 %v2603_v44  ;;  %1415 = vmatpush.bf16.msra.mxu1 %v2731_v48  ;;  %v2782_v44 = vld [vmem:[#allocation5 + $0x388] sm:$0xf]  ;;  %v2655_v48 = vor.u32 %v3495_v43, %v2654_v42  ;;  %v3523_v58 = vld [vmem:[#allocation5 + $0x374] sm:$0xf0]  ;;  %v2639_v61 = vor.u32 %v3491_v55, %v2638_v54  ;;  %v2448_v42 = vld [vmem:[#allocation5 + $0xf8] sm:$0xf0] }
  0x75   :  { %1429 = vmatpush.bf16.msra.mxu2 %v2859_v49  ;;  %v2382_v49 = vld [vmem:[#allocation5 + $0x68] sm:$0xf]  ;;  %v2783_v52 = vor.u32 %v3527_v45, %v2782_v44  ;;  %v3423_v63 = vld [vmem:[#allocation5 + $0x54] sm:$0xf0]  ;;  %v3473_v45 = vld [vmem:[#allocation5 + $0x1ec] sm:$0xf] }
  0x76   :  { %1443 = vmatpush.bf16.msra.mxu3 %v2987_v53  ;;  %v3459_v53 = vld [vmem:[#allocation5 + $0x174] sm:$0xf0]  ;;  %v2383_v59 = vor.u32 %v3427_v50, %v2382_v49  ;;  %v2622_v3 = vld [vmem:[#allocation5 + $0x248] sm:$0xf]  ;;  %v2451_v50 = vor.u32 %v3441_v41, %v2448_v42 }
  0x77   :  { %v3455_v2 = vld [vmem:[#allocation5 + $0x154] sm:$0xf0]  ;;  %v2350_v11 = vld [vmem:[#allocation5 + $0x28] sm:$0xf] }
  0x78   :  { %1402 = vmatpush.bf16.msra.mxu0 %v2587_v60  ;;  %1416 = vmatpush.bf16.msra.mxu1 %v2715_v0  ;;  %v2511_v60 = vor.u32 %v3459_v53, %v2510_v51  ;;  %v2494_v0 = vld [vmem:[#allocation5 + $0x148] sm:$0xf]  ;;  %v3451_v15 = vld [vmem:[#allocation5 + $0x134] sm:$0xf0] }
  0x79   :  { %1430 = vmatpush.bf16.msra.mxu2 %v2843_v1  ;;  %v2767_v1 = vor.u32 %v3523_v58, %v2766_v56  ;;  %v2495_v9 = vor.u32 %v3455_v2, %v2494_v0  ;;  %v2478_v13 = vld [vmem:[#allocation5 + $0x128] sm:$0xf]  ;;  %v3483_v17 = vld [vmem:[#allocation5 + $0x234] sm:$0xf0]  ;;  %v3437_v56 = vld [vmem:[#allocation5 + $0xcc] sm:$0xf] }
  0x7a   :  { %1444 = vmatpush.bf16.msra.mxu3 %v2971_v4  ;;  %v3487_v4 = vld [vmem:[#allocation5 + $0x254] sm:$0xf0]  ;;  %v2606_v16 = vld [vmem:[#allocation5 + $0x228] sm:$0xf]  ;;  %v2479_v25 = vor.u32 %v3451_v15, %v2478_v13  ;;  %v2432_v58 = vld [vmem:[#allocation5 + $0xd8] sm:$0xf0] }
  0x7b   :  { %1403 = vmatmul.bf16.vlgmr.msra.gmra.mxu0 %v3934_v22  ;;  %1417 = vmatmul.bf16.vlgmr.msra.gmra.mxu1 %v3936_v23  ;;  %v2623_v10 = vor.u32 %v3487_v4, %v2622_v3  ;;  %v2334_v21 = vld [vmem:[#allocation5 + $0x8] sm:$0xf]  ;;  %v3415_v24 = vld [vmem:[#allocation5 + $0x14] sm:$0xf0] }
  0x7c   :  { %1451 = vmatpush.bf16.msrb.mxu0 %v2447_v5  ;;  %1465 = vmatpush.bf16.msrb.mxu1 %v2575_v7  ;;  %v2750_v5 = vld [vmem:[#allocation5 + $0x348] sm:$0xf]  ;;  %v3519_v7 = vld [vmem:[#allocation5 + $0x354] sm:$0xf0]  ;;  %v2335_v38 = vor.u32 %v3415_v24, %v2334_v21  ;;  %v2528_v21 = vld [vmem:[#allocation5 + $0x198] sm:$0xf0] }
  0x7d   :  { %1479 = vmatpush.bf16.msrb.mxu2 %v2703_v8  ;;  %1445 = vmatmul.bf16.vlgmr.msra.gmra.mxu3 %v3942_v39  ;;  %v2367_v8 = vor.u32 %v3423_v63, %v2366_v62  ;;  %v2751_v14 = vor.u32 %v3519_v7, %v2750_v5  ;;  %v2462_v27 = vld [vmem:[#allocation5 + $0x108] sm:$0xf]  ;;  %v3447_v28 = vld [vmem:[#allocation5 + $0x114] sm:$0xf0]  ;;  %v2435_v63 = vor.u32 %v3437_v56, %v2432_v58  ;;  %v3433_v5 = vld [vmem:[#allocation5 + $0xac] sm:$0xf] }
  0x7e   :  { %1493 = vmatpush.bf16.msrb.mxu3 %v2831_v12  ;;  %1431 = vmatmul.bf16.vlgmr.msra.gmra.mxu2 %v3940_v35  ;;  %v3419_v12 = vld [vmem:[#allocation5 + $0x34] sm:$0xf0]  ;;  %v2590_v29 = vld [vmem:[#allocation5 + $0x208] sm:$0xf]  ;;  %v2463_v43 = vor.u32 %v3447_v28, %v2462_v27  ;;  %v2416_v7 = vld [vmem:[#allocation5 + $0xb8] sm:$0xf0] }
  0x7f   :  { %v3479_v31 = vld [vmem:[#allocation5 + $0x214] sm:$0xf0]  ;;  %v3086_v37 = vld [vmem:[#allocation5 + $0x5e8] sm:$0xf] }
  0x80   :  { %1452 = vmatpush.bf16.msrb.mxu0 %v2431_v18  ;;  %1466 = vmatpush.bf16.msrb.mxu1 %v2559_v19  ;;  %v2734_v18 = vld [vmem:[#allocation5 + $0x328] sm:$0xf]  ;;  %v3515_v19 = vld [vmem:[#allocation5 + $0x334] sm:$0xf0]  ;;  %v2591_v44 = vor.u32 %v3479_v31, %v2590_v29 }
  0x81   :  { %1480 = vmatpush.bf16.msrb.mxu2 %v2687_v20  ;;  %v2351_v20 = vor.u32 %v3419_v12, %v2350_v11  ;;  %v2735_v30 = vor.u32 %v3515_v19, %v2734_v18  ;;  %v3571_v36 = vld [vmem:[#allocation5 + $0x4f4] sm:$0xf0]  ;;  %v2942_v51 = vld [vmem:[#allocation5 + $0x4c8] sm:$0xf]  ;;  %v2419_v12 = vor.u32 %v3433_v5, %v2416_v7  ;;  %v3429_v18 = vld [vmem:[#allocation5 + $0x8c] sm:$0xf] }
  0x82   :  { %1494 = vmatpush.bf16.msrb.mxu3 %v2815_v26  ;;  %v2607_v26 = vor.u32 %v3483_v17, %v2606_v16  ;;  %v3070_v53 = vld [vmem:[#allocation5 + $0x5c8] sm:$0xf]  ;;  %v3599_v55 = vld [vmem:[#allocation5 + $0x5d4] sm:$0xf0]  ;;  %v2400_v19 = vld [vmem:[#allocation5 + $0x98] sm:$0xf0] }
  0x83   :  { %v3071_v62 = vor.u32 %v3599_v55, %v3070_v53  ;;  %v2926_v0 = vld [vmem:[#allocation5 + $0x4a8] sm:$0xf]  ;;  %v3595_v4 = vld [vmem:[#allocation5 + $0x5b4] sm:$0xf0]  ;;  %v3413_v7 = vld [vmem:[#allocation5 + $0xc] sm:$0xf] }
  0x84   :  { %1453 = vmatpush.bf16.msrb.mxu0 %v2415_v32  ;;  %1467 = vmatpush.bf16.msrb.mxu1 %v2543_v33  ;;  %v2718_v32 = vld [vmem:[#allocation5 + $0x308] sm:$0xf]  ;;  %v3511_v33 = vld [vmem:[#allocation5 + $0x314] sm:$0xf0] }
  0x85   :  { %1481 = vmatpush.bf16.msrb.mxu2 %v2671_v34  ;;  %v2958_v34 = vld [vmem:[#allocation5 + $0x4e8] sm:$0xf]  ;;  %v3591_v17 = vld [vmem:[#allocation5 + $0x594] sm:$0xf0] }
  0x86   :  { %1495 = vmatpush.bf16.msrb.mxu3 %v2799_v40  ;;  %v3603_v40 = vld [vmem:[#allocation5 + $0x5f4] sm:$0xf0]  ;;  %v3054_v2 = vld [vmem:[#allocation5 + $0x5a8] sm:$0xf] }
  0x87   :  { %v3087_v49 = vor.u32 %v3603_v40, %v3086_v37  ;;  %v3055_v11 = vor.u32 %v3595_v4, %v3054_v2  ;;  %v2910_v13 = vld [vmem:[#allocation5 + $0x488] sm:$0xf]  ;;  %v3555_v28 = vld [vmem:[#allocation5 + $0x474] sm:$0xf0] }
  0x88   :  { %1454 = vmatpush.bf16.msrb.mxu0 %v2399_v46  ;;  %1468 = vmatpush.bf16.msrb.mxu1 %v2527_v47  ;;  %v2576_v46 = vld [vmem:[#allocation5 + $0x1f8] sm:$0xf0]  ;;  %v2719_v47 = vor.u32 %v3511_v33, %v2718_v32  ;;  %v3038_v15 = vld [vmem:[#allocation5 + $0x588] sm:$0xf]  ;;  %v3587_v31 = vld [vmem:[#allocation5 + $0x574] sm:$0xf0] }
  0x89   :  { %1482 = vmatpush.bf16.msrb.mxu2 %v2655_v48  ;;  %v2959_v48 = vor.u32 %v3571_v36, %v2958_v34  ;;  %v2579_v54 = vor.u32 %v3473_v45, %v2576_v46  ;;  %v2894_v27 = vld [vmem:[#allocation5 + $0x468] sm:$0xf]  ;;  %v3425_v32 = vld [vmem:[#allocation5 + $0x6c] sm:$0xf]  ;;  %v2384_v33 = vld [vmem:[#allocation5 + $0x78] sm:$0xf0] }
  0x8a   :  { %1496 = vmatpush.bf16.msrb.mxu3 %v2783_v52  ;;  %v3567_v52 = vld [vmem:[#allocation5 + $0x4d4] sm:$0xf0]  ;;  %v3022_v29 = vld [vmem:[#allocation5 + $0x568] sm:$0xf]  ;;  %v3457_v34 = vld [vmem:[#allocation5 + $0x16c] sm:$0xf]  ;;  %v2895_v37 = vor.u32 %v3555_v28, %v2894_v27  ;;  %v2387_v40 = vor.u32 %v3425_v32, %v2384_v33 }
  0x8b   :  { %v2512_v36 = vld [vmem:[#allocation5 + $0x178] sm:$0xf0]  ;;  %v2878_v41 = vld [vmem:[#allocation5 + $0x448] sm:$0xf]  ;;  %v3551_v42 = vld [vmem:[#allocation5 + $0x454] sm:$0xf0] }
  0x8c   :  { %1455 = vmatpush.bf16.msrb.mxu0 %v2383_v59  ;;  %1469 = vmatpush.bf16.msrb.mxu1 %v2511_v60  ;;  %v3469_v59 = vld [vmem:[#allocation5 + $0x1cc] sm:$0xf]  ;;  %v2560_v60 = vld [vmem:[#allocation5 + $0x1d8] sm:$0xf0]  ;;  %v3583_v45 = vld [vmem:[#allocation5 + $0x554] sm:$0xf0] }
  0x8d   :  { %1483 = vmatpush.bf16.msrb.mxu2 %v2639_v61  ;;  %v2943_v61 = vor.u32 %v3567_v52, %v2942_v51  ;;  %v2563_v3 = vor.u32 %v3469_v59, %v2560_v60  ;;  %v3421_v46 = vld [vmem:[#allocation5 + $0x4c] sm:$0xf]  ;;  %v2862_v53 = vld [vmem:[#allocation5 + $0x428] sm:$0xf]  ;;  %v3579_v58 = vld [vmem:[#allocation5 + $0x534] sm:$0xf0] }
  0x8e   :  { %1497 = vmatpush.bf16.msrb.mxu3 %v2767_v1  ;;  %v3563_v1 = vld [vmem:[#allocation5 + $0x4b4] sm:$0xf0]  ;;  %v2990_v55 = vld [vmem:[#allocation5 + $0x528] sm:$0xf]  ;;  %v3417_v59 = vld [vmem:[#allocation5 + $0x2c] sm:$0xf] }
  0x8f   :  { %v2352_v60 = vld [vmem:[#allocation5 + $0x38] sm:$0xf0]  ;;  %v2991_v2 = vor.u32 %v3579_v58, %v2990_v55  ;;  %v2974_v4 = vld [vmem:[#allocation5 + $0x508] sm:$0xf]  ;;  %v3575_v5 = vld [vmem:[#allocation5 + $0x514] sm:$0xf0] }
  0x90   :  { %1456 = vmatpush.bf16.msrb.mxu0 %v2367_v8  ;;  %1470 = vmatpush.bf16.msrb.mxu1 %v2495_v9  ;;  %v3465_v8 = vld [vmem:[#allocation5 + $0x1ac] sm:$0xf]  ;;  %v2544_v9 = vld [vmem:[#allocation5 + $0x1b8] sm:$0xf0] }
  0x91   :  { %1484 = vmatpush.bf16.msrb.mxu2 %v2623_v10  ;;  %v2927_v10 = vor.u32 %v3563_v1, %v2926_v0  ;;  %v2547_v16 = vor.u32 %v3465_v8, %v2544_v9  ;;  %v2846_v0 = vld [vmem:[#allocation5 + $0x408] sm:$0xf]  ;;  %v3543_v1 = vld [vmem:[#allocation5 + $0x414] sm:$0xf0]  ;;  %v2336_v9 = vld [vmem:[#allocation5 + $0x18] sm:$0xf0] }
  0x92   :  { %1498 = vmatpush.bf16.msrb.mxu3 %v2751_v14  ;;  %v3559_v14 = vld [vmem:[#allocation5 + $0x494] sm:$0xf0]  ;;  %v2816_v33 = vld [vmem:[#allocation5 + $0x3d8] sm:$0xf0]  ;;  %v3493_v55 = vld [vmem:[#allocation5 + $0x28c] sm:$0xf] }
  0x93   :  { %v2911_v24 = vor.u32 %v3559_v14, %v2910_v13  ;;  %v2704_v13 = vld [vmem:[#allocation5 + $0x2f8] sm:$0xf0]  ;;  %v3537_v14 = vld [vmem:[#allocation5 + $0x3ec] sm:$0xf] }
  0x94   :  { %1457 = vmatpush.bf16.msrb.mxu0 %v2351_v20  ;;  %1471 = vmatpush.bf16.msrb.mxu1 %v2479_v25  ;;  %v3461_v20 = vld [vmem:[#allocation5 + $0x18c] sm:$0xf]  ;;  %v3039_v25 = vor.u32 %v3591_v17, %v3038_v15  ;;  %v2847_v15 = vor.u32 %v3543_v1, %v2846_v0 }
  0x95   :  { %1485 = vmatpush.bf16.msrb.mxu2 %v2607_v26  ;;  %v2403_v26 = vor.u32 %v3429_v18, %v2400_v19  ;;  %v3569_v17 = vld [vmem:[#allocation5 + $0x4ec] sm:$0xf]  ;;  %v2960_v18 = vld [vmem:[#allocation5 + $0x4f8] sm:$0xf0]  ;;  %v2975_v19 = vor.u32 %v3575_v5, %v2974_v4 }
  0x96   :  { %1499 = vmatpush.bf16.msrb.mxu3 %v2735_v30  ;;  %v2531_v30 = vor.u32 %v3461_v20, %v2528_v21  ;;  %v2339_v20 = vor.u32 %v3413_v7, %v2336_v9  ;;  %v3601_v21 = vld [vmem:[#allocation5 + $0x5ec] sm:$0xf]  ;;  %v2963_v28 = vor.u32 %v3569_v17, %v2960_v18  ;;  %v2768_v7 = vld [vmem:[#allocation5 + $0x378] sm:$0xf0] }
  0x97   :  { %v3525_v58 = vld [vmem:[#allocation5 + $0x38c] sm:$0xf]  ;;  %v2896_v9 = vld [vmem:[#allocation5 + $0x478] sm:$0xf0] }
  0x98   :  { %1458 = vmatpush.bf16.msrb.mxu0 %v2335_v38  ;;  %1472 = vmatpush.bf16.msrb.mxu1 %v2463_v43  ;;  %v3023_v38 = vor.u32 %v3587_v31, %v3022_v29  ;;  %v3006_v43 = vld [vmem:[#allocation5 + $0x548] sm:$0xf]  ;;  %v3501_v29 = vld [vmem:[#allocation5 + $0x2cc] sm:$0xf] }
  0x99   :  { %1486 = vmatpush.bf16.msrb.mxu2 %v2591_v44  ;;  %v2515_v44 = vor.u32 %v3457_v34, %v2512_v36  ;;  %v3007_v51 = vor.u32 %v3583_v45, %v3006_v43  ;;  %v3533_v31 = vld [vmem:[#allocation5 + $0x3cc] sm:$0xf]  ;;  %v2944_v36 = vld [vmem:[#allocation5 + $0x4d8] sm:$0xf0] }
  0x9a   :  { %1500 = vmatpush.bf16.msrb.mxu3 %v2719_v47  ;;  %v2368_v47 = vld [vmem:[#allocation5 + $0x58] sm:$0xf0]  ;;  %v3565_v34 = vld [vmem:[#allocation5 + $0x4cc] sm:$0xf] }
  0x9b   :  { %1459 = vmatmul.bf16.vlgmr.msrb.gmra.mxu0 %v3928_v57  ;;  %1473 = vmatmul.bf16.vlgmr.msrb.gmra.mxu1 %v3931_v6  ;;  %v2371_v52 = vor.u32 %v3421_v46, %v2368_v47  ;;  %v3497_v43 = vld [vmem:[#allocation5 + $0x2ac] sm:$0xf]  ;;  %v2800_v47 = vld [vmem:[#allocation5 + $0x3b8] sm:$0xf0] }
  0x9c   :  { %1507 = vmatpush.bf16.msra.mxu0 %v2959_v48  ;;  %1521 = vmatpush.bf16.msra.mxu1 %v3087_v49  ;;  %v3453_v48 = vld [vmem:[#allocation5 + $0x14c] sm:$0xf]  ;;  %v2496_v49 = vld [vmem:[#allocation5 + $0x158] sm:$0xf0] }
  0x9d   :  { %1535 = vmatpush.bf16.msra.mxu2 %v2451_v50  ;;  %1501 = vmatmul.bf16.vlgmr.msrb.gmra.mxu3 %v3936_v23  ;;  %v2879_v50 = vor.u32 %v3551_v42, %v2878_v41  ;;  %v2499_v56 = vor.u32 %v3453_v48, %v2496_v49  ;;  %v2819_v41 = vor.u32 %v3533_v31, %v2816_v33  ;;  %v3529_v45 = vld [vmem:[#allocation5 + $0x3ac] sm:$0xf]  ;;  %v2928_v49 = vld [vmem:[#allocation5 + $0x4b8] sm:$0xf0] }
  0x9e   :  { %1549 = vmatpush.bf16.msra.mxu3 %v2579_v54  ;;  %1487 = vmatmul.bf16.vlgmr.msrb.gmra.mxu2 %v3934_v22  ;;  %v3547_v54 = vld [vmem:[#allocation5 + $0x434] sm:$0xf0]  ;;  %v2947_v42 = vor.u32 %v3565_v34, %v2944_v36  ;;  %v3561_v48 = vld [vmem:[#allocation5 + $0x4ac] sm:$0xf]  ;;  %v2608_v31 = vld [vmem:[#allocation5 + $0x238] sm:$0xf0] }
  0x9f   :  { %v3521_v4 = vld [vmem:[#allocation5 + $0x36c] sm:$0xf]  ;;  %v2736_v34 = vld [vmem:[#allocation5 + $0x338] sm:$0xf0] }
  0xa0   :  { %1508 = vmatpush.bf16.msra.mxu0 %v2943_v61  ;;  %1522 = vmatpush.bf16.msra.mxu1 %v3071_v62  ;;  %v3449_v61 = vld [vmem:[#allocation5 + $0x12c] sm:$0xf]  ;;  %v2480_v62 = vld [vmem:[#allocation5 + $0x138] sm:$0xf0] }
  0xa1   :  { %1536 = vmatpush.bf16.msra.mxu2 %v2435_v63  ;;  %v2863_v63 = vor.u32 %v3547_v54, %v2862_v53  ;;  %v2483_v8 = vor.u32 %v3449_v61, %v2480_v62  ;;  %v2803_v53 = vor.u32 %v3529_v45, %v2800_v47  ;;  %v2931_v54 = vor.u32 %v3561_v48, %v2928_v49  ;;  %v3557_v61 = vld [vmem:[#allocation5 + $0x48c] sm:$0xf]  ;;  %v2912_v62 = vld [vmem:[#allocation5 + $0x498] sm:$0xf0] }
  0xa2   :  { %1550 = vmatpush.bf16.msra.mxu3 %v2563_v3  ;;  %v2355_v3 = vor.u32 %v3417_v59, %v2352_v60  ;;  %v2784_v60 = vld [vmem:[#allocation5 + $0x398] sm:$0xf0]  ;;  %v3517_v17 = vld [vmem:[#allocation5 + $0x34c] sm:$0xf] }
  0xa3   :  { %v2787_v1 = vor.u32 %v3525_v58, %v2784_v60  ;;  %v3545_v36 = vld [vmem:[#allocation5 + $0x42c] sm:$0xf]  ;;  %v2720_v48 = vld [vmem:[#allocation5 + $0x318] sm:$0xf0] }
  0xa4   :  { %1509 = vmatpush.bf16.msra.mxu0 %v2927_v10  ;;  %1523 = vmatpush.bf16.msra.mxu1 %v3055_v11  ;;  %v3445_v10 = vld [vmem:[#allocation5 + $0x10c] sm:$0xf]  ;;  %v2464_v11 = vld [vmem:[#allocation5 + $0x118] sm:$0xf0] }
  0xa5   :  { %1537 = vmatpush.bf16.msra.mxu2 %v2419_v12  ;;  %v3505_v12 = vld [vmem:[#allocation5 + $0x2ec] sm:$0xf]  ;;  %v3635_v60 = vld [vmem:[#allocation8 + $0xf4] sm:$0xf0] }
  0xa6   :  { %1551 = vmatpush.bf16.msra.mxu3 %v2547_v16  ;;  %v2832_v16 = vld [vmem:[#allocation5 + $0x3f8] sm:$0xf0]  ;;  %v3509_v47 = vld [vmem:[#allocation5 + $0x30c] sm:$0xf] }
  0xa7   :  { %v2835_v27 = vor.u32 %v3537_v14, %v2832_v16  ;;  %v2624_v16 = vld [vmem:[#allocation5 + $0x258] sm:$0xf0] }
  0xa8   :  { %1510 = vmatpush.bf16.msra.mxu0 %v2911_v24  ;;  %1524 = vmatpush.bf16.msra.mxu1 %v3039_v25  ;;  %v3088_v24 = vld [vmem:[#allocation5 + $0x5f8] sm:$0xf0]  ;;  %v2467_v25 = vor.u32 %v3445_v10, %v2464_v11  ;;  %v3585_v10 = vld [vmem:[#allocation5 + $0x56c] sm:$0xf] }
  0xa9   :  { %1538 = vmatpush.bf16.msra.mxu2 %v2403_v26  ;;  %v2707_v26 = vor.u32 %v3505_v12, %v2704_v13  ;;  %v3091_v32 = vor.u32 %v3601_v21, %v3088_v24  ;;  %v3024_v11 = vld [vmem:[#allocation5 + $0x578] sm:$0xf0]  ;;  %v2771_v13 = vor.u32 %v3521_v4, %v2768_v7  ;;  %v3581_v24 = vld [vmem:[#allocation5 + $0x54c] sm:$0xf]  ;;  %v3206_v7 = vld [vmem:[#allocation8 + $0xe0] sm:$0xf] }
  0xaa   :  { %1552 = vmatpush.bf16.msra.mxu3 %v2531_v30  ;;  %v2688_v30 = vld [vmem:[#allocation5 + $0x2d8] sm:$0xf0]  ;;  %v3027_v18 = vor.u32 %v3585_v10, %v3024_v11 }
  0xab   :  { %v2880_v21 = vld [vmem:[#allocation5 + $0x458] sm:$0xf0] }
  0xac   :  { %1511 = vmatpush.bf16.msra.mxu0 %v2895_v37  ;;  %1525 = vmatpush.bf16.msra.mxu1 %v3023_v38  ;;  %v3597_v37 = vld [vmem:[#allocation5 + $0x5cc] sm:$0xf]  ;;  %v3072_v38 = vld [vmem:[#allocation5 + $0x5d8] sm:$0xf0] }
  0xad   :  { %1539 = vmatpush.bf16.msra.mxu2 %v2387_v40  ;;  %v2691_v40 = vor.u32 %v3501_v29, %v2688_v30  ;;  %v3075_v46 = vor.u32 %v3597_v37, %v3072_v38  ;;  %v3481_v30 = vld [vmem:[#allocation5 + $0x22c] sm:$0xf]  ;;  %v2864_v37 = vld [vmem:[#allocation5 + $0x438] sm:$0xf0] }
  0xae   :  { %1553 = vmatpush.bf16.msra.mxu3 %v2515_v44  ;;  %v2672_v44 = vld [vmem:[#allocation5 + $0x2b8] sm:$0xf0]  ;;  %v2867_v45 = vor.u32 %v3545_v36, %v2864_v37 }
  0xaf   :  { %v3627_v36 = vld [vmem:[#allocation8 + $0xb4] sm:$0xf0] }
  0xb0   :  { %1512 = vmatpush.bf16.msra.mxu0 %v2879_v50  ;;  %1526 = vmatpush.bf16.msra.mxu1 %v3007_v51  ;;  %v3593_v50 = vld [vmem:[#allocation5 + $0x5ac] sm:$0xf]  ;;  %v3056_v51 = vld [vmem:[#allocation5 + $0x5b8] sm:$0xf0] }
  0xb1   :  { %1540 = vmatpush.bf16.msra.mxu2 %v2371_v52  ;;  %v2675_v52 = vor.u32 %v3497_v43, %v2672_v44  ;;  %v3059_v59 = vor.u32 %v3593_v50, %v3056_v51  ;;  %v3477_v43 = vld [vmem:[#allocation5 + $0x20c] sm:$0xf]  ;;  %v2848_v51 = vld [vmem:[#allocation5 + $0x418] sm:$0xf0] }
  0xb2   :  { %1554 = vmatpush.bf16.msra.mxu3 %v2499_v56  ;;  %v2656_v56 = vld [vmem:[#allocation5 + $0x298] sm:$0xf0]  ;;  %v3541_v50 = vld [vmem:[#allocation5 + $0x40c] sm:$0xf] }
  0xb3   :  { %v2659_v0 = vor.u32 %v3493_v55, %v2656_v56  ;;  %v3619_v55 = vld [vmem:[#allocation8 + $0x74] sm:$0xf0]  ;;  %v3962_v56 = vld [vmem:[#allocation7] sm:$0xf] }
  0xb4   :  { %1513 = vmatpush.bf16.msra.mxu0 %v2863_v63  ;;  %1527 = vmatpush.bf16.msra.mxu1 %v2991_v2  ;;  %v3589_v63 = vld [vmem:[#allocation5 + $0x58c] sm:$0xf] }
  0xb5   :  { %1541 = vmatpush.bf16.msra.mxu2 %v2355_v3  ;;  %v3489_v2 = vld [vmem:[#allocation5 + $0x26c] sm:$0xf]  ;;  %v2640_v3 = vld [vmem:[#allocation5 + $0x278] sm:$0xf0] }
  0xb6   :  { %1555 = vmatpush.bf16.msra.mxu3 %v2483_v8  ;;  %v3553_v8 = vld [vmem:[#allocation5 + $0x46c] sm:$0xf]  ;;  %v2643_v12 = vor.u32 %v3489_v2, %v2640_v3  ;;  %v3142_v2 = vld [vmem:[#allocation8 + $0x60] sm:$0xf] }
  0xb7   :  { %v2899_v14 = vor.u32 %v3553_v8, %v2896_v9  ;;  %v3617_v3 = vld [vmem:[#allocation8 + $0x64] sm:$0xf0] }
  0xb8   :  { %1514 = vmatpush.bf16.msra.mxu0 %v2847_v15  ;;  %1528 = vmatpush.bf16.msra.mxu1 %v2975_v19  ;;  %v3485_v15 = vld [vmem:[#allocation5 + $0x24c] sm:$0xf]  ;;  %v2752_v19 = vld [vmem:[#allocation5 + $0x358] sm:$0xf0]  ;;  %v3960_v38 = vpop.f32.mrf.mxu1  ;;  %v3143_v9 = vor.u32 %v3617_v3, %v3142_v2  ;;  %v3634_v2 = vld [vmem:[#allocation8 + $0xf4] sm:$0xf] }
  0xb9   :  { %1542 = vmatpush.bf16.msra.mxu2 %v2339_v20  ;;  %v3549_v20 = vld [vmem:[#allocation5 + $0x44c] sm:$0xf]  ;;  %v3216_v3 = vld [vmem:[#allocation8 + $0xf8] sm:$0xf0] }
  0xba   :  { %1556 = vmatpush.bf16.msra.mxu3 %v2467_v25  ;;  %v3008_v25 = vld [vmem:[#allocation5 + $0x558] sm:$0xf0]  ;;  %v3633_v8 = vld [vmem:[#allocation8 + $0xe4] sm:$0xf0] }
  0xbb   :  { %1515 = vmatmul.bf16.vlgmr.msra.gmra.mxu0 %v3940_v35  ;;  %1529 = vmatmul.bf16.vlgmr.msra.gmra.mxu1 %v3942_v39  ;;  %v3011_v33 = vor.u32 %v3581_v24, %v3008_v25 }
  0xbc   :  { %1563 = vmatpush.bf16.msrb.mxu0 %v2707_v26  ;;  %1577 = vmatpush.bf16.msrb.mxu1 %v2835_v27  ;;  %v2627_v26 = vor.u32 %v3485_v15, %v2624_v16  ;;  %v2755_v27 = vor.u32 %v3517_v17, %v2752_v19  ;;  %v1292_v29 = vpop.f32.mrf.mxu0  ;;  %v3207_v15 = vor.u32 %v3633_v8, %v3206_v7  ;;  %v3198_v16 = vld [vmem:[#allocation8 + $0xd0] sm:$0xf]  ;;  %v3631_v17 = vld [vmem:[#allocation8 + $0xd4] sm:$0xf0] }
  0xbd   :  { %1591 = vmatpush.bf16.msrb.mxu2 %v2963_v28  ;;  %1557 = vmatmul.bf16.vlgmr.msra.gmra.mxu3 %v3931_v6  ;;  %v2915_v6 = vor.u32 %v3557_v61, %v2912_v62  ;;  %v2883_v28 = vor.u32 %v3549_v20, %v2880_v21  ;;  %v2723_v61 = vor.u32 %v3509_v47, %v2720_v48  ;;  %v3126_v21 = vld [vmem:[#allocation8 + $0x40] sm:$0xf] }
  0xbe   :  { %1605 = vmatpush.bf16.msrb.mxu3 %v3091_v32  ;;  %1543 = vmatmul.bf16.vlgmr.msra.gmra.mxu2 %v3928_v57  ;;  %v3040_v57 = vld [vmem:[#allocation5 + $0x598] sm:$0xf0]  ;;  %v3513_v32 = vld [vmem:[#allocation5 + $0x32c] sm:$0xf]  ;;  %v2851_v62 = vor.u32 %v3541_v50, %v2848_v51  ;;  %v3199_v24 = vor.u32 %v3631_v17, %v3198_v16  ;;  %v3102_v50 = vld [vmem:[#allocation8 + $0x10] sm:$0xf] }
  0xbf   :  { %v3043_v5 = vor.u32 %v3589_v63, %v3040_v57  ;;  %v2739_v44 = vor.u32 %v3513_v32, %v2736_v34  ;;  %v3182_v34 = vld [vmem:[#allocation8 + $0xb0] sm:$0xf]  ;;  %v3607_v51 = vld [vmem:[#allocation8 + $0x14] sm:$0xf0]  ;;  %v3208_v16 = vld [vmem:[#allocation8 + $0xe8] sm:$0xf0] }
  0xc0   :  { %1564 = vmatpush.bf16.msrb.mxu0 %v2691_v40  ;;  %1578 = vmatpush.bf16.msrb.mxu1 %v2819_v41  ;;  %v3577_v40 = vld [vmem:[#allocation5 + $0x52c] sm:$0xf]  ;;  %v2992_v41 = vld [vmem:[#allocation5 + $0x538] sm:$0xf0]  ;;  %v1334_v10 = vpop.f32.mrf.mxu3 }
  0xc1   :  { %1592 = vmatpush.bf16.msrb.mxu2 %v2947_v42  ;;  %v2611_v42 = vor.u32 %v3481_v30, %v2608_v31  ;;  %v2995_v49 = vor.u32 %v3577_v40, %v2992_v41  ;;  %v3118_v31 = vld [vmem:[#allocation8 + $0x30] sm:$0xf]  ;;  %v3110_v41 = vld [vmem:[#allocation8 + $0x20] sm:$0xf] }
  0xc2   :  { %1606 = vmatpush.bf16.msrb.mxu3 %v3075_v46  ;;  %v2592_v46 = vld [vmem:[#allocation5 + $0x218] sm:$0xf0] }
  0xc3   :  { %v2595_v58 = vor.u32 %v3477_v43, %v2592_v46  ;;  %v3183_v43 = vor.u32 %v3627_v36, %v3182_v34  ;;  %v3262_v36 = vld [vmem:[#allocation8 + $0x150] sm:$0xf] }
  0xc4   :  { %1565 = vmatpush.bf16.msrb.mxu0 %v2675_v52  ;;  %1579 = vmatpush.bf16.msrb.mxu1 %v2803_v53  ;;  %v3573_v52 = vld [vmem:[#allocation5 + $0x50c] sm:$0xf]  ;;  %v2976_v53 = vld [vmem:[#allocation5 + $0x518] sm:$0xf0] }
  0xc5   :  { %1593 = vmatpush.bf16.msrb.mxu2 %v2931_v54  ;;  %v3150_v54 = vld [vmem:[#allocation8 + $0x70] sm:$0xf]  ;;  %v2979_v63 = vor.u32 %v3573_v52, %v2976_v53 }
  0xc6   :  { %1607 = vmatpush.bf16.msrb.mxu3 %v3059_v59  ;;  %v3214_v59 = vld [vmem:[#allocation8 + $0xf0] sm:$0xf]  ;;  %v3151_v57 = vor.u32 %v3619_v55, %v3150_v54  ;;  %v3623_v55 = vld [vmem:[#allocation8 + $0x94] sm:$0xf0] }
  0xc7   :  { %v3215_v4 = vor.u32 %v3635_v60, %v3214_v59  ;;  %v3166_v54 = vld [vmem:[#allocation8 + $0x90] sm:$0xf] }
  0xc8   :  { %1566 = vmatpush.bf16.msrb.mxu0 %v2659_v0  ;;  %1580 = vmatpush.bf16.msrb.mxu1 %v2787_v1  ;;  %v315_v1 = vperm.slane %v3962_v56, 0 }
  0xc9   :  { %1594 = vmatpush.bf16.msrb.mxu2 %v2915_v6  ;;  %v1320_v0 = vpop.f32.mrf.mxu2  ;;  %v1294_v6 = vpop.f32.mrf.mxu0 }
  0xca   :  { %1608 = vmatpush.bf16.msrb.mxu3 %v3043_v5  ;;  %v1308_v5 = vpop.f32.mrf.mxu1  ;;  %v1293_v11 = vadd.f32 %v1292_v29, %v315_v1 }
  0xcc   :  { %1567 = vmatpush.bf16.msrb.mxu0 %v2643_v12  ;;  %1581 = vmatpush.bf16.msrb.mxu1 %v2771_v13  ;;  %v1295_v12 = vadd.f32 %v1294_v6, %v315_v1  ;;  %v3134_v13 = vld [vmem:[#allocation8 + $0x50] sm:$0xf]  ;;  %v1307_v19 = vadd.f32 %v3960_v38, %v1293_v11  ;;  %v3158_v1 = vld [vmem:[#allocation8 + $0x80] sm:$0xf]  ;;  %v3621_v6 = vld [vmem:[#allocation8 + $0x84] sm:$0xf0] }
  0xcd   :  { %1595 = vmatpush.bf16.msrb.mxu2 %v2899_v14  ;;  %v3615_v14 = vld [vmem:[#allocation8 + $0x54] sm:$0xf0]  ;;  %v3159_v11 = vor.u32 %v3621_v6, %v3158_v1 }
  0xce   :  { %1609 = vmatpush.bf16.msrb.mxu3 %v3027_v18  ;;  %v3135_v18 = vor.u32 %v3615_v14, %v3134_v13  ;;  %v1309_v20 = vadd.f32 %v1308_v5, %v1295_v12  ;;  %v1321_v29 = vadd.f32 %v1320_v0, %v1307_v19  ;;  %v3152_v0 = vld [vmem:[#allocation8 + $0x78] sm:$0xf0]  ;;  %v3616_v12 = vld [vmem:[#allocation8 + $0x64] sm:$0xf]  ;;  %v3144_v13 = vld [vmem:[#allocation8 + $0x68] sm:$0xf0]  ;;  %v3219_v14 = vor.u32 %v3634_v2, %v3216_v3 }
  0xcf   :  { %v3147_v19 = vor.u32 %v3616_v12, %v3144_v13  ;;  %v3606_v2 = vld [vmem:[#allocation8 + $0x14] sm:$0xf]  ;;  %v3254_v3 = vld [vmem:[#allocation8 + $0x140] sm:$0xf]  ;;  %v3168_v13 = vld [vmem:[#allocation8 + $0x98] sm:$0xf0] }
  0xd0   :  { %1568 = vmatpush.bf16.msrb.mxu0 %v2627_v26  ;;  %1582 = vmatpush.bf16.msrb.mxu1 %v2755_v27  ;;  %v3190_v26 = vld [vmem:[#allocation8 + $0xc0] sm:$0xf]  ;;  %v3629_v27 = vld [vmem:[#allocation8 + $0xc4] sm:$0xf0]  ;;  %v1335_v38 = vadd.f32 %v1334_v10, %v1321_v29  ;;  %v3622_v12 = vld [vmem:[#allocation8 + $0x94] sm:$0xf] }
  0xd1   :  { %1596 = vmatpush.bf16.msrb.mxu2 %v2883_v28  ;;  %v1322_v25 = vpop.f32.mrf.mxu2  ;;  %v3191_v32 = vor.u32 %v3629_v27, %v3190_v26  ;;  %v3630_v26 = vld [vmem:[#allocation8 + $0xd4] sm:$0xf]  ;;  %v3200_v27 = vld [vmem:[#allocation8 + $0xd8] sm:$0xf0] }
  0xd2   :  { %1610 = vmatpush.bf16.msrb.mxu3 %v3011_v33  ;;  %v1323_v30 = vadd.f32 %v1322_v25, %v1309_v20  ;;  %v1336_v33 = vpop.f32.mrf.mxu3  ;;  %v3614_v20 = vld [vmem:[#allocation8 + $0x54] sm:$0xf]  ;;  %v3651_v25 = vld [vmem:[#allocation8 + $0x174] sm:$0xf0]  ;;  %v3203_v34 = vor.u32 %v3630_v26, %v3200_v27  ;;  %v3620_v26 = vld [vmem:[#allocation8 + $0x84] sm:$0xf] }
  0xd3   :  { %v3160_v27 = vld [vmem:[#allocation8 + $0x88] sm:$0xf0] }
  0xd4   :  { %1569 = vmatpush.bf16.msrb.mxu0 %v2611_v42  ;;  %1583 = vmatpush.bf16.msrb.mxu1 %v2739_v44  ;;  %v1337_v40 = vadd.f32 %v1336_v33, %v1323_v30  ;;  %v3609_v42 = vld [vmem:[#allocation8 + $0x24] sm:$0xf0]  ;;  %v3174_v44 = vld [vmem:[#allocation8 + $0xa0] sm:$0xf]  ;;  %v3128_v33 = vld [vmem:[#allocation8 + $0x48] sm:$0xf0] }
  0xd5   :  { %1597 = vmatpush.bf16.msrb.mxu2 %v2867_v45  ;;  %v3625_v45 = vld [vmem:[#allocation8 + $0xa4] sm:$0xf0]  ;;  %v3111_v47 = vor.u32 %v3609_v42, %v3110_v41  ;;  %v3192_v41 = vld [vmem:[#allocation8 + $0xc8] sm:$0xf0] }
  0xd6   :  { %1611 = vmatpush.bf16.msrb.mxu3 %v2995_v49  ;;  %v3175_v52 = vor.u32 %v3625_v45, %v3174_v44 }
  0xd8   :  { %1570 = vmatpush.bf16.msrb.mxu0 %v2595_v58  ;;  %1584 = vmatpush.bf16.msrb.mxu1 %v2723_v61  ;;  %v1348_v28 = vpop.f32.mrf.mxu0  ;;  %v3103_v58 = vor.u32 %v3607_v51, %v3102_v50  ;;  %v3094_v61 = vld [vmem:[#allocation8] sm:$0xf]  ;;  %v3626_v51 = vld [vmem:[#allocation8 + $0xb4] sm:$0xf] }
  0xd9   :  { %1598 = vmatpush.bf16.msrb.mxu2 %v2851_v62  ;;  %v1349_v48 = vadd.f32 %v1348_v28, %v1335_v38  ;;  %v3605_v62 = vld [vmem:[#allocation8 + $0x4] sm:$0xf0] }
  0xda   :  { %1612 = vmatpush.bf16.msrb.mxu3 %v2979_v63  ;;  %v3618_v63 = vld [vmem:[#allocation8 + $0x74] sm:$0xf] }
  0xdb   :  { %1571 = vmatmul.bf16.vlgmr.msrb.gmra.mxu0 %v3934_v22  ;;  %1585 = vmatmul.bf16.vlgmr.msrb.gmra.mxu1 %v3936_v23  ;;  %v3613_v22 = vld [vmem:[#allocation8 + $0x44] sm:$0xf0] }
  0xdc   :  { %2021 = vmatpush.bf16.msra.mxu0 %v3151_v57  ;;  %2035 = vmatpush.bf16.msra.mxu1 %v3215_v4  ;;  %v3127_v23 = vor.u32 %v3613_v22, %v3126_v21  ;;  %v3167_v57 = vor.u32 %v3623_v55, %v3166_v54  ;;  %v3095_v4 = vor.u32 %v3605_v62, %v3094_v61  ;;  %v3136_v21 = vld [vmem:[#allocation8 + $0x58] sm:$0xf0]  ;;  %v3608_v55 = vld [vmem:[#allocation8 + $0x24] sm:$0xf]  ;;  %v3176_v62 = vld [vmem:[#allocation8 + $0xa8] sm:$0xf0] }
  0xdd   :  { %1599 = vmatmul.bf16.vlgmr.msrb.gmra.mxu2 %v3940_v35  ;;  %1613 = vmatmul.bf16.vlgmr.msrb.gmra.mxu3 %v3942_v39  ;;  %v1362_v35 = vpop.f32.mrf.mxu1  ;;  %v3611_v39 = vld [vmem:[#allocation8 + $0x34] sm:$0xf0]  ;;  %v3139_v30 = vor.u32 %v3614_v20, %v3136_v21  ;;  %v3624_v61 = vld [vmem:[#allocation8 + $0xa4] sm:$0xf]  ;;  %v3641_v20 = vld [vmem:[#allocation8 + $0x124] sm:$0xf0] }
  0xde   :  { %v3119_v37 = vor.u32 %v3611_v39, %v3118_v31  ;;  %v1363_v59 = vadd.f32 %v1362_v35, %v1349_v48  ;;  %v3649_v35 = vld [vmem:[#allocation8 + $0x164] sm:$0xf0]  ;;  %v3612_v31 = vld [vmem:[#allocation8 + $0x44] sm:$0xf]  ;;  %v3120_v48 = vld [vmem:[#allocation8 + $0x38] sm:$0xf0] }
  0xdf   :  { %v3131_v44 = vor.u32 %v3612_v31, %v3128_v33  ;;  %v3604_v21 = vld [vmem:[#allocation8 + $0x4] sm:$0xf]  ;;  %v3163_v33 = vor.u32 %v3620_v26, %v3160_v27  ;;  %v3657_v26 = vld [vmem:[#allocation8 + $0x1a4] sm:$0xf0] }
  0xe0   :  { %2022 = vmatpush.bf16.msra.mxu0 %v3143_v9  ;;  %2036 = vmatpush.bf16.msra.mxu1 %v3207_v15  ;;  %v1350_v46 = vpop.f32.mrf.mxu0  ;;  %v1619_v7 = vmax.f32 %v1363_v59, 0.0  ;;  %v3155_v9 = vor.u32 %v3618_v63, %v3152_v0  ;;  %v1390_v10 = vpop.f32.mrf.mxu3  ;;  %v3632_v15 = vld [vmem:[#allocation8 + $0xe4] sm:$0xf] }
  0xe1   :  { %v1351_v49 = vadd.f32 %v1350_v46, %v1337_v40  ;;  %v1376_v5 = vpop.f32.mrf.mxu2  ;;  %v3211_v22 = vor.u32 %v3632_v15, %v3208_v16  ;;  %v3628_v40 = vld [vmem:[#allocation8 + $0xc4] sm:$0xf] }
  0xe4   :  { %2023 = vmatpush.bf16.msra.mxu0 %v3135_v18  ;;  %2037 = vmatpush.bf16.msra.mxu1 %v3199_v24  ;;  %v316_v18 = vperm.slane %v3962_v56, 1  ;;  %v3278_v24 = vld [vmem:[#allocation8 + $0x170] sm:$0xf] }
  0xe5   :  { %v1364_v53 = vpop.f32.mrf.mxu1  ;;  %v3279_v28 = vor.u32 %v3651_v25, %v3278_v24  ;;  %v3171_v24 = vor.u32 %v3622_v12, %v3168_v13  ;;  %v3310_v13 = vld [vmem:[#allocation8 + $0x1b0] sm:$0xf] }
  0xe6   :  { %v1365_v60 = vadd.f32 %v1364_v53, %v1351_v49  ;;  %v1377_v29 = vadd.f32 %v1376_v5, %v316_v18  ;;  %v3195_v49 = vor.u32 %v3628_v40, %v3192_v41  ;;  %v3104_v5 = vld [vmem:[#allocation8 + $0x18] sm:$0xf0]  ;;  %v3222_v41 = vld [vmem:[#allocation8 + $0x100] sm:$0xf] }
  0xe7   :  { %2049 = vmatpush.bf16.msra.mxu2 %v3279_v28 }
  0xe8   :  { %2024 = vmatpush.bf16.msra.mxu0 %v3127_v23  ;;  %2038 = vmatpush.bf16.msra.mxu1 %v3191_v32  ;;  %v1623_v8 = vmax.f32 %v1365_v60, 0.0  ;;  %v3270_v23 = vld [vmem:[#allocation8 + $0x160] sm:$0xf]  ;;  %v1392_v38 = vpop.f32.mrf.mxu3  ;;  %v1391_v42 = vadd.f32 %v1390_v10, %v1377_v29  ;;  %v3643_v10 = vld [vmem:[#allocation8 + $0x134] sm:$0xf0] }
  0xe9   :  { %v3271_v39 = vor.u32 %v3649_v35, %v3270_v23  ;;  %v1378_v32 = vpop.f32.mrf.mxu2 }
  0xea   :  { %v3970_v17 = vpack.c.bf16 %v1623_v8, %v1619_v7  ;;  %v1379_v50 = vadd.f32 %v1378_v32, %v316_v18  ;;  %v3179_v7 = vor.u32 %v3624_v61, %v3176_v62  ;;  %v3107_v18 = vor.u32 %v3606_v2, %v3104_v5  ;;  %v3639_v32 = vld [vmem:[#allocation8 + $0x114] sm:$0xf0]  ;;  %v3644_v62 = vld [vmem:[#allocation8 + $0x144] sm:$0xf]  ;;  %v3318_v5 = vld [vmem:[#allocation8 + $0x1c0] sm:$0xf] }
  0xeb   :  { %2050 = vmatpush.bf16.msra.mxu2 %v3271_v39  ;;  %v3230_v39 = vld [vmem:[#allocation8 + $0x110] sm:$0xf] }
  0xec   :  { %2025 = vmatpush.bf16.msra.mxu0 %v3119_v37  ;;  %2039 = vmatpush.bf16.msra.mxu1 %v3183_v43  ;;  %v3647_v37 = vld [vmem:[#allocation8 + $0x154] sm:$0xf0]  ;;  %v1393_v60 = vadd.f32 %v1392_v38, %v1379_v50  ;;  %v3342_v50 = vld [vmem:[#allocation8 + $0x1f0] sm:$0xf] }
  0xed   :  { %v3263_v45 = vor.u32 %v3647_v37, %v3262_v36  ;;  %v3231_v36 = vor.u32 %v3639_v32, %v3230_v39  ;;  %v3224_v39 = vld [vmem:[#allocation8 + $0x108] sm:$0xf0] }
  0xef   :  { %2051 = vmatpush.bf16.msra.mxu2 %v3263_v45  ;;  %v3280_v45 = vld [vmem:[#allocation8 + $0x178] sm:$0xf0] }
  0xf0   :  { %2026 = vmatpush.bf16.msra.mxu0 %v3111_v47  ;;  %2040 = vmatpush.bf16.msra.mxu1 %v3175_v52  ;;  %v3610_v47 = vld [vmem:[#allocation8 + $0x34] sm:$0xf]  ;;  %v3184_v52 = vld [vmem:[#allocation8 + $0xb8] sm:$0xf0] }
  0xf1   :  { %v3123_v54 = vor.u32 %v3610_v47, %v3120_v48  ;;  %v3187_v59 = vor.u32 %v3626_v51, %v3184_v52  ;;  %v3648_v47 = vld [vmem:[#allocation8 + $0x164] sm:$0xf]  ;;  %v3272_v48 = vld [vmem:[#allocation8 + $0x168] sm:$0xf0]  ;;  %v3667_v51 = vld [vmem:[#allocation8 + $0x1f4] sm:$0xf0] }
  0xf2   :  { %v3343_v52 = vor.u32 %v3667_v51, %v3342_v50 }
  0xf4   :  { %2027 = vmatpush.bf16.msra.mxu0 %v3103_v58  ;;  %2041 = vmatpush.bf16.msra.mxu1 %v3167_v57  ;;  %v3112_v58 = vld [vmem:[#allocation8 + $0x28] sm:$0xf0] }
  0xf5   :  { %v3115_v6 = vor.u32 %v3608_v55, %v3112_v58  ;;  %2063 = vmatpush.bf16.msra.mxu3 %v3343_v52  ;;  %v3334_v55 = vld [vmem:[#allocation8 + $0x1e0] sm:$0xf]  ;;  %v3665_v58 = vld [vmem:[#allocation8 + $0x1e4] sm:$0xf0] }
  0xf8   :  { %2028 = vmatpush.bf16.msra.mxu0 %v3095_v4  ;;  %2042 = vmatpush.bf16.msra.mxu1 %v3159_v11  ;;  %v1404_v43 = vpop.f32.mrf.mxu0  ;;  %v1418_v46 = vpop.f32.mrf.mxu1  ;;  %v3645_v4 = vld [vmem:[#allocation8 + $0x144] sm:$0xf0] }
  0xf9   :  { %v1405_v53 = vadd.f32 %v1404_v43, %v1391_v42  ;;  %v3255_v8 = vor.u32 %v3645_v4, %v3254_v3  ;;  %v3637_v42 = vld [vmem:[#allocation8 + $0x104] sm:$0xf0]  ;;  %v3642_v3 = vld [vmem:[#allocation8 + $0x134] sm:$0xf]  ;;  %v3248_v4 = vld [vmem:[#allocation8 + $0x138] sm:$0xf0] }
  0xfa   :  { %v3223_v43 = vor.u32 %v3637_v42, %v3222_v41 }
  0xfb   :  { %2029 = vmatmul.bf16.vlgmr.msra.gmra.mxu0 %v3970_v17  ;;  %v1419_v57 = vadd.f32 %v1418_v46, %v1405_v53  ;;  %2052 = vmatpush.bf16.msra.mxu2 %v3255_v8  ;;  %v3646_v53 = vld [vmem:[#allocation8 + $0x154] sm:$0xf]  ;;  %v3661_v8 = vld [vmem:[#allocation8 + $0x1c4] sm:$0xf0] }
  0xfc   :  { %2077 = vmatpush.bf16.msrb.mxu0 %v3155_v9  ;;  %2091 = vmatpush.bf16.msrb.mxu1 %v3219_v14  ;;  %v3246_v9 = vld [vmem:[#allocation8 + $0x130] sm:$0xf]  ;;  %v3319_v12 = vor.u32 %v3661_v8, %v3318_v5  ;;  %v3312_v8 = vld [vmem:[#allocation8 + $0x1b8] sm:$0xf0] }
  0xfd   :  { %v3247_v15 = vor.u32 %v3643_v10, %v3246_v9  ;;  %v3640_v9 = vld [vmem:[#allocation8 + $0x124] sm:$0xf]  ;;  %v3240_v10 = vld [vmem:[#allocation8 + $0x128] sm:$0xf0] }
  0xff   :  { %2053 = vmatpush.bf16.msra.mxu2 %v3247_v15 }
 0x100   :  { %2078 = vmatpush.bf16.msrb.mxu0 %v3147_v19  ;;  %2092 = vmatpush.bf16.msrb.mxu1 %v3211_v22  ;;  %v1406_v0 = vpop.f32.mrf.mxu0  ;;  %v1446_v1 = vpop.f32.mrf.mxu3  ;;  %v3238_v19 = vld [vmem:[#allocation8 + $0x120] sm:$0xf]  ;;  %v3096_v22 = vld [vmem:[#allocation8 + $0x8] sm:$0xf0] }
 0x101   :  { %v1432_v63 = vpop.f32.mrf.mxu2  ;;  %v1407_v11 = vadd.f32 %v1406_v0, %v1393_v60  ;;  %v1420_v14 = vpop.f32.mrf.mxu1  ;;  %v3239_v23 = vor.u32 %v3641_v20, %v3238_v19  ;;  %v3099_v31 = vor.u32 %v3604_v21, %v3096_v22  ;;  %v3335_v60 = vor.u32 %v3665_v58, %v3334_v55  ;;  %v3232_v19 = vld [vmem:[#allocation8 + $0x118] sm:$0xf0] }
 0x102   :  { %v1433_v16 = vadd.f32 %v1432_v63, %v1419_v57  ;;  %v3256_v63 = vld [vmem:[#allocation8 + $0x148] sm:$0xf0]  ;;  %v317_v0 = vperm.slane %v3962_v56, 2 }
 0x103   :  { %v1421_v25 = vadd.f32 %v1420_v14, %v1407_v11  ;;  %2054 = vmatpush.bf16.msra.mxu2 %v3239_v23  ;;  %2064 = vmatpush.bf16.msra.mxu3 %v3335_v60  ;;  %v3259_v57 = vor.u32 %v3644_v62, %v3256_v63  ;;  %v3659_v14 = vld [vmem:[#allocation8 + $0x1b4] sm:$0xf0]  ;;  %v3662_v62 = vld [vmem:[#allocation8 + $0x1d4] sm:$0xf]  ;;  %v3328_v63 = vld [vmem:[#allocation8 + $0x1d8] sm:$0xf0] }
 0x104   :  { %2079 = vmatpush.bf16.msrb.mxu0 %v3139_v30  ;;  %2093 = vmatpush.bf16.msrb.mxu1 %v3203_v34  ;;  %v1447_v35 = vadd.f32 %v1446_v1, %v1433_v16  ;;  %v3326_v1 = vld [vmem:[#allocation8 + $0x1d0] sm:$0xf]  ;;  %v3243_v16 = vor.u32 %v3640_v9, %v3240_v10  ;;  %v3311_v21 = vor.u32 %v3659_v14, %v3310_v13  ;;  %v3656_v10 = vld [vmem:[#allocation8 + $0x1a4] sm:$0xf]  ;;  %v318_v13 = vperm.slane %v3962_v56, 3 }
 0x106   :  { %v1620_v37 = vmax.f32 %v1447_v35, 0.0 }
 0x107   :  { %2055 = vmatpush.bf16.msra.mxu2 %v3231_v36  ;;  %v3294_v36 = vld [vmem:[#allocation8 + $0x190] sm:$0xf] }
 0x108   :  { %2080 = vmatpush.bf16.msrb.mxu0 %v3131_v44  ;;  %2094 = vmatpush.bf16.msrb.mxu1 %v3195_v49  ;;  %v1448_v30 = vpop.f32.mrf.mxu3  ;;  %v3650_v44 = vld [vmem:[#allocation8 + $0x174] sm:$0xf]  ;;  %v3275_v49 = vor.u32 %v3648_v47, %v3272_v48 }
 0x109   :  { %v1434_v28 = vpop.f32.mrf.mxu2  ;;  %v3283_v46 = vor.u32 %v3650_v44, %v3280_v45  ;;  %v3286_v45 = vld [vmem:[#allocation8 + $0x180] sm:$0xf]  ;;  %v3666_v48 = vld [vmem:[#allocation8 + $0x1f4] sm:$0xf] }
 0x10a   :  { %v1435_v29 = vadd.f32 %v1434_v28, %v1421_v25  ;;  %v3302_v25 = vld [vmem:[#allocation8 + $0x1a0] sm:$0xf] }
 0x10b   :  { %2056 = vmatpush.bf16.msra.mxu2 %v3223_v43  ;;  %v3303_v35 = vor.u32 %v3657_v26, %v3302_v25 }
 0x10c   :  { %2081 = vmatpush.bf16.msrb.mxu0 %v3123_v54  ;;  %2095 = vmatpush.bf16.msrb.mxu1 %v3187_v59  ;;  %v1449_v34 = vadd.f32 %v1448_v30, %v1435_v29  ;;  %v3264_v54 = vld [vmem:[#allocation8 + $0x158] sm:$0xf0] }
 0x10e   :  { %v1624_v38 = vmax.f32 %v1449_v34, 0.0 }
 0x10f   :  { %2105 = vmatpush.bf16.msrb.mxu2 %v3283_v46  ;;  %v3653_v46 = vld [vmem:[#allocation8 + $0x184] sm:$0xf0] }
 0x110   :  { %2082 = vmatpush.bf16.msrb.mxu0 %v3115_v6  ;;  %2096 = vmatpush.bf16.msrb.mxu1 %v3179_v7  ;;  %v1628_v40 = vpack.c.bf16 %v1624_v38, %v1620_v37  ;;  %v3663_v6 = vld [vmem:[#allocation8 + $0x1d4] sm:$0xf0]  ;;  %v3251_v7 = vor.u32 %v3642_v3, %v3248_v4  ;;  %v3287_v47 = vor.u32 %v3653_v46, %v3286_v45  ;;  %v3674_v46 = vld [vmem:[#allocation10 + $0x30] sm:$0xff] }
 0x111   :  { %v3327_v2 = vor.u32 %v3663_v6, %v3326_v1  ;;  %v3655_v37 = vld [vmem:[#allocation8 + $0x194] sm:$0xf0]  ;;  %v3660_v6 = vld [vmem:[#allocation8 + $0x1c4] sm:$0xf] }
 0x112   :  { %2043 = vmatmul.bf16.vlgmr.msra.gmra.mxu1 %v1628_v40  ;;  %v3675_v45 = vld [vmem:[#allocation10 + $0x38] sm:$0xff] }
 0x113   :  { %2106 = vmatpush.bf16.msrb.mxu2 %v3275_v49  ;;  %2065 = vmatpush.bf16.msra.mxu3 %v3327_v2  ;;  %v3344_v49 = vld [vmem:[#allocation8 + $0x1f8] sm:$0xf0]  ;;  %v3320_v2 = vld [vmem:[#allocation8 + $0x1c8] sm:$0xf0] }
 0x114   :  { %2083 = vmatpush.bf16.msrb.mxu0 %v3107_v18  ;;  %2097 = vmatpush.bf16.msrb.mxu1 %v3171_v24  ;;  %v3638_v18 = vld [vmem:[#allocation8 + $0x114] sm:$0xf]  ;;  %v3347_v51 = vor.u32 %v3666_v48, %v3344_v49  ;;  %v3323_v3 = vor.u32 %v3660_v6, %v3320_v2  ;;  %v3672_v48 = vld [vmem:[#allocation10 + $0x20] sm:$0xff]  ;;  %v3671_v49 = vld [vmem:[#allocation10 + $0x18] sm:$0xff] }
 0x115   :  { %v3235_v28 = vor.u32 %v3638_v18, %v3232_v19  ;;  %v3652_v18 = vld [vmem:[#allocation8 + $0x184] sm:$0xf] }
 0x117   :  { %2066 = vmatpush.bf16.msra.mxu3 %v3319_v12 }
 0x118   :  { %2084 = vmatpush.bf16.msrb.mxu0 %v3099_v31  ;;  %2098 = vmatpush.bf16.msrb.mxu1 %v3163_v33  ;;  %v1460_v59 = vpop.f32.mrf.mxu0  ;;  %v1474_v61 = vpop.f32.mrf.mxu1  ;;  %v3636_v31 = vld [vmem:[#allocation8 + $0x104] sm:$0xf] }
 0x119   :  { %v1461_v11 = vadd.f32 %v1460_v59, %v317_v0  ;;  %v3227_v33 = vor.u32 %v3636_v31, %v3224_v39 }
 0x11b   :  { %2085 = vmatmul.bf16.vlgmr.msrb.gmra.mxu0 %v3970_v17  ;;  %v3267_v17 = vor.u32 %v3646_v53, %v3264_v54  ;;  %v1475_v22 = vadd.f32 %v1474_v61, %v1461_v11  ;;  %2067 = vmatpush.bf16.msra.mxu3 %v3311_v21  ;;  %v3664_v54 = vld [vmem:[#allocation8 + $0x1e4] sm:$0xf]  ;;  %v3304_v11 = vld [vmem:[#allocation8 + $0x1a8] sm:$0xf0] }
 0x11c   :  { %v3307_v12 = vor.u32 %v3656_v10, %v3304_v11  ;;  %2271 = vmatpush.bf16.msra.mxu0 %v3675_v45 }
 0x11d   :  { %2107 = vmatpush.bf16.msrb.mxu2 %v3267_v17  ;;  %v3336_v17 = vld [vmem:[#allocation8 + $0x1e8] sm:$0xf0] }
 0x11e   :  { %v3339_v59 = vor.u32 %v3664_v54, %v3336_v17  ;;  %v3681_v54 = vld [vmem:[#allocation10 + $0x68] sm:$0xff]  ;;  %v3668_v17 = vld [vmem:[#allocation10] sm:$0xff] }
 0x11f   :  { %2068 = vmatpush.bf16.msra.mxu3 %v3303_v35 }
 0x120   :  { %v1462_v20 = vpop.f32.mrf.mxu0  ;;  %v1476_v24 = vpop.f32.mrf.mxu1  ;;  %2272 = vmatpush.bf16.msra.mxu0 %v3674_v46 }
 0x121   :  { %2108 = vmatpush.bf16.msrb.mxu2 %v3259_v57  ;;  %v1488_v15 = vpop.f32.mrf.mxu2  ;;  %v1502_v27 = vpop.f32.mrf.mxu3  ;;  %v1463_v23 = vadd.f32 %v1462_v20, %v317_v0  ;;  %v3331_v0 = vor.u32 %v3662_v62, %v3328_v63  ;;  %v3677_v63 = vld [vmem:[#allocation10 + $0x48] sm:$0xff] }
 0x122   :  { %2099 = vmatmul.bf16.vlgmr.msrb.gmra.mxu1 %v1628_v40  ;;  %v1489_v29 = vadd.f32 %v1488_v15, %v1475_v22  ;;  %v3295_v40 = vor.u32 %v3655_v37, %v3294_v36  ;;  %v3654_v15 = vld [vmem:[#allocation8 + $0x194] sm:$0xf] }
 0x123   :  { %v1477_v30 = vadd.f32 %v1476_v24, %v1463_v23  ;;  %v3288_v24 = vld [vmem:[#allocation8 + $0x188] sm:$0xf0] }
 0x124   :  { %v1503_v34 = vadd.f32 %v1502_v27, %v1489_v29  ;;  %2069 = vmatpush.bf16.msra.mxu3 %v3295_v40  ;;  %v3291_v25 = vor.u32 %v3652_v18, %v3288_v24 }
 0x125   :  { %2109 = vmatpush.bf16.msrb.mxu2 %v3251_v7  ;;  %v3658_v7 = vld [vmem:[#allocation8 + $0x1b4] sm:$0xf] }
 0x126   :  { %v3315_v9 = vor.u32 %v3658_v7, %v3312_v8 }
 0x128   :  { %2070 = vmatpush.bf16.msra.mxu3 %v3287_v47  ;;  %v3673_v47 = vld [vmem:[#allocation10 + $0x28] sm:$0xff] }
 0x129   :  { %2110 = vmatpush.bf16.msrb.mxu2 %v3243_v16  ;;  %v1490_v32 = vpop.f32.mrf.mxu2  ;;  %v1504_v43 = vpop.f32.mrf.mxu3  ;;  %v3296_v16 = vld [vmem:[#allocation8 + $0x198] sm:$0xf0]  ;;  %2273 = vmatpush.bf16.msra.mxu0 %v3673_v47 }
 0x12a   :  { %v1491_v42 = vadd.f32 %v1490_v32, %v1477_v30  ;;  %v3299_v22 = vor.u32 %v3654_v15, %v3296_v16 }
 0x12c   :  { %v1505_v50 = vadd.f32 %v1504_v43, %v1491_v42  ;;  %2119 = vmatpush.bf16.msrb.mxu3 %v3347_v51  ;;  %v3670_v51 = vld [vmem:[#allocation10 + $0x10] sm:$0xff] }
 0x12d   :  { %2111 = vmatpush.bf16.msrb.mxu2 %v3235_v28  ;;  %2274 = vmatpush.bf16.msra.mxu0 %v3672_v48 }
 0x130   :  { %2120 = vmatpush.bf16.msrb.mxu3 %v3339_v59  ;;  %v3678_v59 = vld [vmem:[#allocation10 + $0x50] sm:$0xff] }
 0x131   :  { %2112 = vmatpush.bf16.msrb.mxu2 %v3227_v33  ;;  %2275 = vmatpush.bf16.msra.mxu0 %v3671_v49 }
 0x134   :  { %2121 = vmatpush.bf16.msrb.mxu3 %v3331_v0  ;;  %v3676_v0 = vld [vmem:[#allocation10 + $0x40] sm:$0xff] }
 0x135   :  { %2276 = vmatpush.bf16.msra.mxu0 %v3670_v51 }
 0x138   :  { %v1516_v38 = vpop.f32.mrf.mxu0  ;;  %v1530_v41 = vpop.f32.mrf.mxu1  ;;  %2122 = vmatpush.bf16.msrb.mxu3 %v3323_v3 }
 0x139   :  { %v1517_v44 = vadd.f32 %v1516_v38, %v1503_v34 }
 0x13b   :  { %v1531_v52 = vadd.f32 %v1530_v41, %v1517_v44 }
 0x13c   :  { %2123 = vmatpush.bf16.msrb.mxu3 %v3315_v9 }
 0x13d   :  { %v1621_v60 = vmax.f32 %v1531_v52, 0.0  ;;  %v3682_v52 = vld [vmem:[#allocation10 + $0x70] sm:$0xff] }
 0x140   :  { %v1518_v53 = vpop.f32.mrf.mxu0  ;;  %v1532_v58 = vpop.f32.mrf.mxu1  ;;  %2124 = vmatpush.bf16.msrb.mxu3 %v3307_v12 }
 0x141   :  { %v1519_v55 = vadd.f32 %v1518_v53, %v1505_v50  ;;  %v1544_v4 = vpop.f32.mrf.mxu2  ;;  %v1558_v5 = vpop.f32.mrf.mxu3  ;;  %v3683_v50 = vld [vmem:[#allocation10 + $0x78] sm:$0xff]  ;;  %v3669_v53 = vld [vmem:[#allocation10 + $0x8] sm:$0xff] }
 0x142   :  { %v1545_v19 = vadd.f32 %v1544_v4, %v318_v13  ;;  %2285 = vmatpush.bf16.msra.mxu1 %v3683_v50  ;;  %2277 = vmatpush.bf16.msra.mxu0 %v3669_v53 }
 0x143   :  { %v1533_v61 = vadd.f32 %v1532_v58, %v1519_v55  ;;  %v3680_v55 = vld [vmem:[#allocation10 + $0x60] sm:$0xff]  ;;  %v3679_v58 = vld [vmem:[#allocation10 + $0x58] sm:$0xff] }
 0x144   :  { %2125 = vmatpush.bf16.msrb.mxu3 %v3299_v22  ;;  %v1559_v27 = vadd.f32 %v1558_v5, %v1545_v19 }
 0x145   :  { %v1625_v57 = vmax.f32 %v1533_v61, 0.0 }
 0x146   :  { %2286 = vmatpush.bf16.msra.mxu1 %v3682_v52  ;;  %2278 = vmatpush.bf16.msra.mxu0 %v3668_v17 }
 0x147   :  { %v1629_v1 = vpack.c.bf16 %v1625_v57, %v1621_v60  ;;  %v1695_v57 = vld [vmem:[%s3993_s4] sm:$0x3] }
 0x148   :  { %2126 = vmatpush.bf16.msrb.mxu3 %v3291_v25 }
 0x149   :  { %2057 = vmatmul.bf16.vlgmr.msra.gmra.mxu2 %v1629_v1  ;;  %v1546_v14 = vpop.f32.mrf.mxu2  ;;  %v1560_v20 = vpop.f32.mrf.mxu3 }
 0x14a   :  { %v1547_v28 = vadd.f32 %v1546_v14, %v318_v13  ;;  %2287 = vmatpush.bf16.msra.mxu1 %v3681_v54 }
 0x14c   :  { %v1561_v56 = vadd.f32 %v1560_v20, %v1547_v28 }
 0x14e   :  { %2288 = vmatpush.bf16.msra.mxu1 %v3680_v55 }
 0x152   :  { %2289 = vmatpush.bf16.msra.mxu1 %v3679_v58 }
 0x156   :  { %2290 = vmatpush.bf16.msra.mxu1 %v3678_v59 }
 0x158   :  { %v1572_v21 = vpop.f32.mrf.mxu0  ;;  %v1586_v26 = vpop.f32.mrf.mxu1 }
 0x159   :  { %2113 = vmatmul.bf16.vlgmr.msrb.gmra.mxu2 %v1629_v1  ;;  %v1573_v23 = vadd.f32 %v1572_v21, %v1559_v27  ;;  %v1697_v1 = vperm.slane %v1695_v57, 0  ;;  %v1698_v21 = vperm.slane %v1695_v57, 1 }
 0x15a   :  { %2291 = vmatpush.bf16.msra.mxu1 %v3677_v63 }
 0x15b   :  { %v1587_v31 = vadd.f32 %v1586_v26, %v1573_v23 }
 0x15e   :  { %2292 = vmatpush.bf16.msra.mxu1 %v3676_v0 }
 0x160   :  { %v1600_v35 = vpop.f32.mrf.mxu2  ;;  %v1614_v29 = vpop.f32.mrf.mxu3 }
 0x161   :  { %v1574_v30 = vpop.f32.mrf.mxu0  ;;  %v1601_v32 = vadd.f32 %v1600_v35, %v1587_v31  ;;  %v1588_v33 = vpop.f32.mrf.mxu1 }
 0x162   :  { %v1575_v39 = vadd.f32 %v1574_v30, %v1561_v56 }
 0x163   :  { %v1615_v37 = vadd.f32 %v1614_v29, %v1601_v32 }
 0x164   :  { %v1589_v34 = vadd.f32 %v1588_v33, %v1575_v39 }
 0x165   :  { %v1622_v42 = vmax.f32 %v1615_v37, 0.0 }
 0x168   :  { %v1602_v36 = vpop.f32.mrf.mxu2  ;;  %v1616_v40 = vpop.f32.mrf.mxu3 }
 0x169   :  { %v1603_v38 = vadd.f32 %v1602_v36, %v1589_v34 }
 0x16b   :  { %v1617_v41 = vadd.f32 %v1616_v40, %v1603_v38  ;;  %v3703_v40 = vld [vmem:[%s3995_s6] ss:$0 sm:$0xff] }
 0x16d   :  { %v1626_v43 = vmax.f32 %v1617_v41, 0.0 }
 0x16f   :  { %v1630_v44 = vpack.c.bf16 %v1626_v43, %v1622_v42 }
 0x171   :  { %2071 = vmatmul.bf16.vlgmr.msra.gmra.mxu3 %v1630_v44 }
 0x178   :  { %v2030_v60 = vpop.f32.mrf.mxu0 }
 0x179   :  { %v2031_v5 = vadd.f32 %v2030_v60, %v1697_v1 }
 0x180   :  { %v2032_v6 = vpop.f32.mrf.mxu0 }
 0x181   :  { %2127 = vmatmul.bf16.vlgmr.msrb.gmra.mxu3 %v1630_v44  ;;  %v2033_v7 = vadd.f32 %v2032_v6, %v1697_v1 }
 0x18f   :  { %v2044_v61 = vpop.f32.mrf.mxu1 }
 0x190   :  { %v2045_v8 = vadd.f32 %v2044_v61, %v2031_v5 }
 0x197   :  { %v2046_v2 = vpop.f32.mrf.mxu1 }
 0x198   :  { %v2047_v9 = vadd.f32 %v2046_v2, %v2033_v7  ;;  %v2086_v11 = vpop.f32.mrf.mxu0 }
 0x199   :  { %v2087_v26 = vadd.f32 %v2086_v11, %v1698_v21 }
 0x19f   :  { %v2100_v14 = vpop.f32.mrf.mxu1 }
 0x1a0   :  { %v2088_v24 = vpop.f32.mrf.mxu0  ;;  %v2101_v23 = vadd.f32 %v2100_v14, %v2087_v26 }
 0x1a1   :  { %v2089_v28 = vadd.f32 %v2088_v24, %v1698_v21 }
 0x1a7   :  { %v2102_v27 = vpop.f32.mrf.mxu1 }
 0x1a8   :  { %v2103_v56 = vadd.f32 %v2102_v27, %v2089_v28 }
 0x1cc   :  { %v2058_v62 = vpop.f32.mrf.mxu2 }
 0x1cd   :  { %v2059_v10 = vadd.f32 %v2058_v62, %v2045_v8 }
 0x1d4   :  { %v2060_v3 = vpop.f32.mrf.mxu2 }
 0x1d5   :  { %v2061_v12 = vadd.f32 %v2060_v3, %v2047_v9 }
 0x1dc   :  { %v2114_v18 = vpop.f32.mrf.mxu2 }
 0x1dd   :  { %v2115_v29 = vadd.f32 %v2114_v18, %v2101_v23 }
 0x1e4   :  { %v2116_v35 = vpop.f32.mrf.mxu2 }
 0x1e5   :  { %v2117_v30 = vadd.f32 %v2116_v35, %v2103_v56 }
 0x1f4   :  { %v2072_v4 = vpop.f32.mrf.mxu3 }
 0x1f5   :  { %v2073_v13 = vadd.f32 %v2072_v4, %v2059_v10 }
 0x1f7   :  { %v2133_v19 = vmax.f32 %v2073_v13, 0.0 }
 0x1fc   :  { %v2074_v15 = vpop.f32.mrf.mxu3 }
 0x1fd   :  { %v2075_v16 = vadd.f32 %v2074_v15, %v2061_v12 }
 0x1ff   :  { %v2135_v20 = vmax.f32 %v2075_v16, 0.0 }
 0x201   :  { %v2137_v22 = vpack.c.bf16 %v2135_v20, %v2133_v19 }
 0x203   :  { %2279 = vmatmul.bf16.vlgmr.msra.gmra.mxu0 %v2137_v22 }
 0x204   :  { %v2128_v25 = vpop.f32.mrf.mxu3 }
 0x205   :  { %v2129_v31 = vadd.f32 %v2128_v25, %v2115_v29 }
 0x207   :  { %v2134_v33 = vmax.f32 %v2129_v31, 0.0 }
 0x20c   :  { %v2130_v39 = vpop.f32.mrf.mxu3 }
 0x20d   :  { %v2131_v32 = vadd.f32 %v2130_v39, %v2117_v30 }
 0x20f   :  { %v2136_v34 = vmax.f32 %v2131_v32, 0.0 }
 0x211   :  { %v2138_v36 = vpack.c.bf16 %v2136_v34, %v2134_v33 }
 0x213   :  { %2293 = vmatmul.bf16.vlgmr.msra.gmra.mxu1 %v2138_v36 }
 0x280   :  { %v2280_v37 = vpop.f32.mrf.mxu0 }
 0x281   :  { %v2281_v42 = vadd.f32 %v3703_v40, %v2280_v37 }
 0x288   :  { %v2282_v41 = vpop.f32.mrf.mxu0 }
 0x289   :  { %v2283_v43 = vadd.f32 %v3703_v40, %v2282_v41 }
 0x290   :  { %v2294_v38 = vpop.f32.mrf.mxu1 }
 0x291   :  { %v2295_v45 = vadd.f32 %v2294_v38, %v2281_v42 }
 0x298   :  { %v2296_v44 = vpop.f32.mrf.mxu1 }
 0x299   :  { %v2297_v46 = vadd.f32 %v2296_v44, %v2283_v43 }
 0x29b   :  { %v3687_v47 = vpack.c.bf16 %v2297_v46, %v2295_v45 }
 0x29d   :  { %3688 = vst [vmem:[#allocation11] sm:$0xff] %v3687_v47  }
 0x29e   :  { %2315 = dma.vmem_to_hbm [thread:$0]  %s2308_s10, 128, %s2310_s13, [#allocation4], %s3867_s29, %s3867_s29, %s3868_s30  }
 0x29f   :  { %3854 = dma.done.wait [#allocation4], 128  }
 0x2a0   :  { %3855 = vsyncadd [#allocation4], 4294967168 }
 0x2a1   :  { %2320 = vsyncpa [#allocation3], 1 }
 0x2a2   :  { %2321 = vsyncpa [#allocation6], 1 }
 0x2a3   :  { %2322 = vsyncpa [#allocation9], 1 }
 0x2a4   :  { %2323 = vsyncpa [#allocation4], 1 }

</bundles_post_ra>
